<compile_context>
chip_gen: v7x
topology: tpu7x:2x2x1
jax: 0.10.0
libtpu: 0.0.40
codegen_flags: <defaults>
</compile_context>

<pallas_src>
import math
import numpy as np
import jax
import jax.numpy as jnp
from jax.experimental import pallas as pl
from jax.experimental.pallas import tpu as pltpu


def _round_up(a: int, b: int) -> int:
    return (a + b - 1) // b * b


def _check_masks(params, D):
    """Best-effort check that masks follow the module's 'none'/'ordered_{i%2}' scheme."""
    half = D // 2 if D > 1 else 0
    for i, p in enumerate(params):
        m = p.get("mask")
        if m is None:
            continue
        try:
            marr = np.asarray(m).reshape(-1)
        except Exception:       # tracers under jit: skip the check
            return
        exp = np.zeros((D,), np.float32)
        if D > 1:
            if i % 2 == 0:
                exp[:half] = 1.0
            else:
                exp[half:] = 1.0
        if not np.allclose(marr, exp):
            raise ValueError(
                "coupling_flow_forward assumes the standard CouplingFlow masks "
                "('none' for dim==1, ordered_{i%2} otherwise)")


def _pack_params(params, D, compute_dtype):
    """Pack all layer weights into two VMEM-friendly arrays.

    Returns (wpack, colpack, metas):
      wpack   : (Rw, Cw) compute_dtype — every matmul weight, stored transposed
                (out, in); each sub-matrix starts at a sublane-aligned row
                offset (multiple of 8) and is zero-padded on columns to Cw.
      colpack : (Rc, 1)  float32       — every (len, 1) column (biases and the
                TimeTanh weights), stacked on the sublane axis.
      metas   : per-layer static slice metadata (plain Python ints/tuples).
    """
    half = D // 2 if D > 1 else 0
    mats, cols, metas = [], [], []
    m_off, c_off, max_cols = 0, 0, 1

    def add_mat(a):
        nonlocal m_off, max_cols
        a = a.astype(compute_dtype)
        r, c = a.shape
        info = (m_off, r, c)
        mats.append((m_off, a))
        m_off += _round_up(r, 8)
        max_cols = max(max_cols, c)
        return info

    def add_col(a):
        nonlocal c_off
        a = a.reshape(-1, 1).astype(jnp.float32)
        L = a.shape[0]
        info = (c_off, L)
        cols.append((c_off, a))
        c_off += _round_up(L, 8)
        return info

    for i, p in enumerate(params):
        mlp = p["mlp"]
        W0, b0 = mlp[0]           # (D+1, H0), (1, H0)
        Wl, bl = mlp[-1]          # (Hl, 2D), (1, 2D)
        wt = p["wtime"]           # (1, 2D)
        if D > 1:
            pass_is_lo = (i % 2 == 0)
            p_sl = slice(0, half) if pass_is_lo else slice(half, D)
            t_sl = slice(half, D) if pass_is_lo else slice(0, half)
        else:                     # 'none' mask: everything is transformed
            pass_is_lo, p_sl, t_sl = True, slice(0, 0), slice(0, D)
        sh_sl = slice(D + t_sl.start, D + t_sl.stop)
        n_pass = p_sl.stop - p_sl.start
        meta = {
            "pass_is_lo": pass_is_lo,
            "n_trans": t_sl.stop - t_sl.start,
            # first Linear: concat([x*mask, t]) folded in -> pass-half columns
            # of W0 only, plus a separate rank-1 time column.
            "w0x": add_mat(W0[p_sl, :].T) if n_pass > 0 else None,   # (H0, n_pass)
            "w0t": add_col(W0[D:D + 1, :].T),                        # (H0, 1)
            "b0": add_col(b0.T),                                     # (H0, 1)
            "hidden": tuple((add_mat(W.T), add_col(b.T)) for (W, b) in mlp[1:-1]),
            # last Linear pre-split into scale/shift halves, transformed rows only.
            "ws": add_mat(Wl[:, t_sl].T),                            # (n_trans, Hl)
            "bs": add_col(bl[:, t_sl].T),
            "wb": add_mat(Wl[:, sh_sl].T),
            "bb": add_col(bl[:, sh_sl].T),
            "wts": add_col(wt[:, t_sl].T),                           # (n_trans, 1)
            "wtb": add_col(wt[:, sh_sl].T),
        }
        metas.append(meta)

    wpack = jnp.zeros((max(m_off, 8), max_cols), compute_dtype)
    for off, a in mats:
        wpack = wpack.at[off:off + a.shape[0], :a.shape[1]].set(a)
    colpack = jnp.zeros((max(c_off, 8), 1), jnp.float32)
    for off, a in cols:
        colpack = colpack.at[off:off + a.shape[0], :].set(a)
    return wpack, colpack, metas


def _make_kernel(metas, half, n_layers, has_t0, compute_dtype):
    cdt = compute_dtype

    def kernel(*refs):
        if has_t0:
            x_ref, t_ref, t0_ref, w_ref, c_ref, y_ref = refs
        else:
            x_ref, t_ref, w_ref, c_ref, y_ref = refs
            t0_ref = None

        def mat(info):                       # static slice of the matrix pack
            off, r, c = info
            return w_ref[off:off + r, :c]

        def col(info):                       # static slice of the column pack
            off, L = info
            return c_ref[off:off + L, :]

        def apply_layer(x_lo, x_hi, t_row, meta, reverse):
            if meta["pass_is_lo"]:
                x_pass, x_trans = x_lo, x_hi
            else:
                x_pass, x_trans = x_hi, x_lo
            # --- latent_net first layer (mask + concat folded into the weights)
            pre = col(meta["w0t"]) * t_row + col(meta["b0"])          # (H0, TM) f32
            if meta["w0x"] is not None:
                pre = pre + jnp.dot(mat(meta["w0x"]), x_pass.astype(cdt),
                                    preferred_element_type=jnp.float32)
            h = jnp.tanh(pre.astype(cdt))
            # --- remaining hidden layers
            for wm, bm in meta["hidden"]:
                pre = jnp.dot(mat(wm), h,
                              preferred_element_type=jnp.float32) + col(bm)
                h = jnp.tanh(pre.astype(cdt))
            # --- scale/shift + TimeTanh, for the transformed half only (f32)
            scale = jnp.dot(mat(meta["ws"]), h,
                            preferred_element_type=jnp.float32) + col(meta["bs"])
            shift = jnp.dot(mat(meta["wb"]), h,
                            preferred_element_type=jnp.float32) + col(meta["bb"])
            t_scale = jnp.tanh(col(meta["wts"]) * t_row)
            t_shift = jnp.tanh(col(meta["wtb"]) * t_row)
            xt = x_trans.astype(jnp.float32)
            if reverse:
                y = (xt - shift * t_shift) * jnp.exp(-scale * t_scale)
            else:
                y = xt * jnp.exp(scale * t_scale) + shift * t_shift
            if meta["pass_is_lo"]:
                return x_lo, y
            return y, x_hi

        t_row = t_ref[...].astype(jnp.float32)              # (1, TM)
        if half > 0:
            x_lo = x_ref[0:half, :].astype(jnp.float32)
            x_hi = x_ref[half:, :].astype(jnp.float32)
        else:
            x_lo, x_hi = None, x_ref[...].astype(jnp.float32)

        # Static (unrolled) layer loops: x halves stay resident between layers.
        if has_t0:
            t0_row = t0_ref[...].astype(jnp.float32)
            for li in reversed(range(n_layers)):
                x_lo, x_hi = apply_layer(x_lo, x_hi, t0_row, metas[li], True)
        for li in range(n_layers):
            x_lo, x_hi = apply_layer(x_lo, x_hi, t_row, metas[li], False)

        if half > 0:
            y_ref[0:half, :] = x_lo.astype(y_ref.dtype)
            y_ref[half:, :] = x_hi.astype(y_ref.dtype)
        else:
            y_ref[...] = x_hi.astype(y_ref.dtype)

    return kernel


def coupling_flow_forward(params, x, t, t0=None, *, tm=None,
                          compute_dtype=jnp.float32):
    """Equivalent of CouplingFlow.forward(x, t, t0) — one fused Pallas call."""
    B, Sx, D = x.shape
    S = t.shape[-2]
    assert Sx in (1, S), f"x.shape[-2] must be 1 or {S}, got {Sx}"
    assert t.shape == (B, S, 1), f"t must have shape {(B, S, 1)}, got {t.shape}"
    if Sx == 1:
        x = jnp.broadcast_to(x, (B, S, D))   # == torch repeat_interleave(dim=-2)
    N = B * S
    n_layers = len(params)
    has_t0 = t0 is not None
    half = D // 2 if D > 1 else 0
    hmax = max(max(W.shape[1] for (W, _) in p["mlp"][:-1]) for p in params)

    _check_masks(params, D)
    wpack, colpack, metas = _pack_params(params, D, compute_dtype)
    weight_bytes = (wpack.size * wpack.dtype.itemsize + colpack.size * 4)

    # --- tile size: largest lane tile within a conservative VMEM budget, capped
    #     so the grid has >= 2 steps when possible (megacore / v7x dual-TC).
    npad128 = _round_up(N, 128)
    if tm is None:
        per_lane = 16 * D + 64 + 16 * hmax          # bytes per lane column (f32)
        budget = (16 << 20) - min(weight_bytes, 8 << 20)
        tm = max(128, min(1024, budget // max(per_lane, 1)) // 128 * 128)
    else:
        tm = max(128, _round_up(tm, 128))
    tm = min(tm, npad128)
    if npad128 >= 256:
        tm = min(tm, _round_up(npad128 // 2, 128))
    N_pad = _round_up(N, tm)

    # --- lane-dense transposed layout: rows on the 128-lane axis.
    xT = x.reshape(N, D).T                          # (D, N)
    tT = t.reshape(N, 1).T                          # (1, N)
    pad = N_pad - N
    if pad:
        xT = jnp.pad(xT, ((0, 0), (0, pad)))
        tT = jnp.pad(tT, ((0, 0), (0, pad)))
    inputs = [xT, tT]
    if has_t0:
        t0T = jnp.broadcast_to(t0, (B, S, 1)).reshape(N, 1).T
        if pad:
            t0T = jnp.pad(t0T, ((0, 0), (0, pad)))
        inputs.append(t0T)
    inputs += [wpack, colpack]

    # --- cost estimate (helps XLA schedule the surrounding pad/transpose ops).
    passes = 2 if has_t0 else 1
    flops_row, trans_row = 0, 0
    for i, p in enumerate(params):
        hdims = [W.shape[1] for (W, _) in p["mlp"][:-1]]
        n_trans = metas[i]["n_trans"]
        n_pass = (D - n_trans) if D > 1 else 0
        f = 2 * hdims[0] * n_pass
        for a, b in zip(hdims[:-1], hdims[1:]):
            f += 2 * a * b
        f += 2 * 2 * n_trans * hdims[-1]
        flops_row += f
        trans_row += sum(hdims) + 3 * n_trans
    cost = pl.CostEstimate(
        flops=int(N * passes * flops_row),
        transcendentals=int(N * passes * trans_row),
        bytes_accessed=int(8 * N * D + 4 * N * passes + weight_bytes))

    est_vmem = (16 * D + 64 + 16 * hmax) * tm + 2 * weight_bytes + (2 << 20)
    vmem_limit = int(min(64 << 20, max(32 << 20, est_vmem)))

    kernel = _make_kernel(metas, half, n_layers, has_t0, compute_dtype)

    def call(single_buffer_weights):
        def const_spec(shape):
            imap = lambda i: (0,) * len(shape)
            if single_buffer_weights:
                # Weights never change across grid steps -> skip the 2nd buffer.
                return pl.BlockSpec(shape, imap, pipeline_mode=pl.Buffered(1))
            return pl.BlockSpec(shape, imap)

        in_specs = [pl.BlockSpec((D, tm), lambda i: (0, i)),
                    pl.BlockSpec((1, tm), lambda i: (0, i))]
        if has_t0:
            in_specs.append(pl.BlockSpec((1, tm), lambda i: (0, i)))
        in_specs += [const_spec(wpack.shape), const_spec(colpack.shape)]

        return pl.pallas_call(
            kernel,
            out_shape=jax.ShapeDtypeStruct((D, N_pad), x.dtype),
            grid=(N_pad // tm,),
            in_specs=in_specs,
            out_specs=pl.BlockSpec((D, tm), lambda i: (0, i)),
            compiler_params=pltpu.CompilerParams(
                dimension_semantics=("parallel",),
                vmem_limit_bytes=vmem_limit),
            cost_estimate=cost,
        )(*inputs)

    try:
        yT = call(True)
    except Exception:
        # pl.Buffered(1) not supported on this JAX/Mosaic build -> plain specs.
        yT = call(False)

    return yT[:, :N].T.reshape(B, S, D)


def init_coupling_flow_params(key, dim, n_layers, hidden_dims,
                              time_hidden_dim=None):
    """Deterministic synthetic parameters mirroring the module's __init__ shapes."""
    params = []
    for i in range(n_layers):
        key, k_t = jax.random.split(key)

        # mask: 'none' -> zeros (transform everything); 'ordered_{i%2}' ->
        # one half passes through, the other half is transformed.
        m = jnp.zeros((dim,), jnp.float32)
        if dim > 1:
            half = dim // 2
            if i % 2 == 0:
                m = m.at[:half].set(1.0)
            else:
                m = m.at[half:].set(1.0)
        mask = m[None, :]

        wtime = 0.5 * jax.random.normal(k_t, (1, 2 * dim), jnp.float32)

        dims = [dim + 1] + list(hidden_dims) + [2 * dim]  # MLP(dim+1, hidden, 2*dim)
        mlp = []
        for li in range(len(dims) - 1):
            key, kw, kb = jax.random.split(key, 3)
            bound = 1.0 / math.sqrt(dims[li])
            W = jax.random.uniform(kw, (dims[li], dims[li + 1]), jnp.float32,
                                   -bound, bound)
            if li == len(dims) - 2:
                b = jnp.zeros((1, dims[li + 1]), jnp.float32)  # stribor zeros last bias
            else:
                b = jax.random.uniform(kb, (1, dims[li + 1]), jnp.float32,
                                       -bound, bound)
            mlp.append((W, b))

        params.append({"mask": mask, "wtime": wtime, "mlp": mlp})
    return params


def reference_forward(params, x, t, t0=None):
    """Pure-JAX reference of the same semantics (for correctness check)."""
    if x.shape[-2] == 1:
        x = jnp.repeat(x, t.shape[-2], axis=-2)

    def layer(x, tt, p, reverse):
        D = x.shape[-1]
        mask = p["mask"][0]
        z = jnp.concatenate([x * mask, tt], axis=-1)
        h = z
        for (W, b) in p["mlp"][:-1]:
            h = jnp.tanh(h @ W + b[0])
        W, b = p["mlp"][-1]
        out = h @ W + b[0]
        scale, shift = out[..., :D], out[..., D:]
        temb = jnp.tanh(tt * p["wtime"][0])
        t_scale, t_shift = temb[..., :D], temb[..., D:]
        if reverse:
            y = (x - shift * t_shift) * jnp.exp(-scale * t_scale)
        else:
            y = x * jnp.exp(scale * t_scale) + shift * t_shift
        return y * (1.0 - mask) + x * mask

    if t0 is not None:
        t0b = jnp.broadcast_to(t0, t.shape)
        for p in reversed(params):
            x = layer(x, t0b, p, True)
    for p in params:
        x = layer(x, t, p, False)
    return x


if __name__ == "__main__":
    key = jax.random.PRNGKey(0)
    B, S, D = 2, 8, 4
    n_layers, hidden_dims = 2, [32, 32]

    kx, kt, kt0, kp = jax.random.split(key, 4)
    x = jax.random.normal(kx, (B, 1, D), jnp.float32)          # single-step state
    t = jax.random.uniform(kt, (B, S, 1), jnp.float32)         # query times
    t0 = jax.random.uniform(kt0, (B, 1, 1), jnp.float32)       # initial times
    params = init_coupling_flow_params(kp, D, n_layers, hidden_dims)

    # f32 path, without t0.
    y = jax.block_until_ready(coupling_flow_forward(params, x, t))
    assert y.shape == (B, S, D)
    if not bool(jnp.allclose(y, reference_forward(params, x, t),
                             rtol=1e-3, atol=1e-3)):
        raise SystemExit("mismatch (no t0) between Pallas kernel and JAX reference")

    # f32 path, with t0 (inverse pass fused into the same kernel).
    y2 = jax.block_until_ready(coupling_flow_forward(params, x, t, t0))
    if not bool(jnp.allclose(y2, reference_forward(params, x, t, t0),
                             rtol=1e-3, atol=1e-3)):
        raise SystemExit("mismatch (with t0) between Pallas kernel and JAX reference")

    # bf16 compute path (v6e/v7x EUP/MXU win); looser tolerance by construction.
    y3 = jax.block_until_ready(
        coupling_flow_forward(params, x, t, t0, compute_dtype=jnp.bfloat16))
    if not bool(jnp.allclose(y3, reference_forward(params, x, t, t0),
                             rtol=5e-2, atol=5e-2)):
        raise SystemExit("mismatch (bf16) between Pallas kernel and JAX reference")

    # dim == 1 corner case ('none' mask: every feature transformed each layer).
    params1 = init_coupling_flow_params(kp, 1, 2, [16])
    x1 = jax.random.normal(kx, (B, 1, 1), jnp.float32)
    y4 = jax.block_until_ready(coupling_flow_forward(params1, x1, t, t0))
    if not bool(jnp.allclose(y4, reference_forward(params1, x1, t, t0),
                             rtol=1e-3, atol=1e-3)):
        raise SystemExit("mismatch (dim=1) between Pallas kernel and JAX reference")

    print("KERNEL_OK")
</pallas_src>

<mosaic_0001>
module attributes {stable_mosaic.version = 11 : i64} {
  func.func @kernel(%arg0: i32, %arg1: memref<4x128xf32, #tpu.memory_space<vmem>>, %arg2: memref<1x128xf32, #tpu.memory_space<vmem>>, %arg3: memref<160x32xf32, #tpu.memory_space<vmem>>, %arg4: memref<256x1xf32, #tpu.memory_space<vmem>>, %arg5: memref<4x128xf32, #tpu.memory_space<vmem>>) attributes {dimension_semantics = [#tpu.dimension_semantics<parallel>], iteration_bounds = array<i64: 1>, scalar_prefetch = 0 : i64, scratch_operands = 0 : i64, tpu.core_type = #tpu.core_type<tc>, window_params = [{transform_indices = @transform_0, window_bounds = array<i64: 4, 128>}, {transform_indices = @transform_1, window_bounds = array<i64: 1, 128>}, {pipeline_mode = #tpu.pipeline_mode<synchronous>, transform_indices = @transform_2, window_bounds = array<i64: 160, 32>}, {pipeline_mode = #tpu.pipeline_mode<synchronous>, transform_indices = @transform_3, window_bounds = array<i64: 256, 1>}, {transform_indices = @transform_4, window_bounds = array<i64: 4, 128>}]} {
    %c0 = arith.constant 0 : index
    %c0_0 = arith.constant 0 : index
    %0 = vector.load %arg2[%c0, %c0_0] : memref<1x128xf32, #tpu.memory_space<vmem>>, vector<1x128xf32>
    %c0_1 = arith.constant 0 : index
    %c0_2 = arith.constant 0 : index
    %1 = vector.load %arg1[%c0_1, %c0_2] : memref<4x128xf32, #tpu.memory_space<vmem>>, vector<2x128xf32>
    %c2 = arith.constant 2 : index
    %c0_3 = arith.constant 0 : index
    %2 = vector.load %arg1[%c2, %c0_3] : memref<4x128xf32, #tpu.memory_space<vmem>>, vector<2x128xf32>
    %c0_4 = arith.constant 0 : index
    %c0_5 = arith.constant 0 : index
    %3 = vector.load %arg4[%c0_4, %c0_5] : memref<256x1xf32, #tpu.memory_space<vmem>>, vector<32x1xf32>
    %4 = vector.broadcast %3 : vector<32x1xf32> to vector<32x128xf32>
    %5 = vector.broadcast %0 : vector<1x128xf32> to vector<32x128xf32>
    %6 = arith.mulf %4, %5 : vector<32x128xf32>
    %c32 = arith.constant 32 : index
    %c0_6 = arith.constant 0 : index
    %7 = vector.load %arg4[%c32, %c0_6] : memref<256x1xf32, #tpu.memory_space<vmem>>, vector<32x1xf32>
    %8 = vector.broadcast %7 : vector<32x1xf32> to vector<32x128xf32>
    %9 = arith.addf %6, %8 : vector<32x128xf32>
    %c0_7 = arith.constant 0 : index
    %c0_8 = arith.constant 0 : index
    %10 = vector.load %arg3[%c0_7, %c0_8] : memref<160x32xf32, #tpu.memory_space<vmem>>, vector<32x2xf32>
    %cst = arith.constant dense<0.000000e+00> : vector<32x128xf32>
    %11 = tpu.matmul %10, %1, %cst {dimension_numbers = #tpu.dot_dimension_numbers<[1], [0], [0], [1], [0, 0, 1, 1], [], []>} : vector<32x2xf32>, vector<2x128xf32>, vector<32x128xf32> -> vector<32x128xf32>
    %12 = arith.addf %9, %11 : vector<32x128xf32>
    %13 = math.tanh %12 : vector<32x128xf32>
    %c32_9 = arith.constant 32 : index
    %c0_10 = arith.constant 0 : index
    %14 = vector.load %arg3[%c32_9, %c0_10] : memref<160x32xf32, #tpu.memory_space<vmem>>, vector<32x32xf32>
    %cst_11 = arith.constant dense<0.000000e+00> : vector<32x128xf32>
    %15 = tpu.matmul %14, %13, %cst_11 {dimension_numbers = #tpu.dot_dimension_numbers<[1], [0], [0], [1], [0, 0, 1, 1], [], []>} : vector<32x32xf32>, vector<32x128xf32>, vector<32x128xf32> -> vector<32x128xf32>
    %c64 = arith.constant 64 : index
    %c0_12 = arith.constant 0 : index
    %16 = vector.load %arg4[%c64, %c0_12] : memref<256x1xf32, #tpu.memory_space<vmem>>, vector<32x1xf32>
    %17 = vector.broadcast %16 : vector<32x1xf32> to vector<32x128xf32>
    %18 = arith.addf %15, %17 : vector<32x128xf32>
    %19 = math.tanh %18 : vector<32x128xf32>
    %c64_13 = arith.constant 64 : index
    %c0_14 = arith.constant 0 : index
    %20 = vector.load %arg3[%c64_13, %c0_14] : memref<160x32xf32, #tpu.memory_space<vmem>>, vector<2x32xf32>
    %cst_15 = arith.constant dense<0.000000e+00> : vector<2x128xf32>
    %21 = tpu.matmul %20, %19, %cst_15 {dimension_numbers = #tpu.dot_dimension_numbers<[1], [0], [0], [1], [0, 0, 1, 1], [], []>} : vector<2x32xf32>, vector<32x128xf32>, vector<2x128xf32> -> vector<2x128xf32>
    %c96 = arith.constant 96 : index
    %c0_16 = arith.constant 0 : index
    %22 = vector.load %arg4[%c96, %c0_16] : memref<256x1xf32, #tpu.memory_space<vmem>>, vector<2x1xf32>
    %23 = vector.broadcast %22 : vector<2x1xf32> to vector<2x128xf32>
    %24 = arith.addf %21, %23 : vector<2x128xf32>
    %c72 = arith.constant 72 : index
    %c0_17 = arith.constant 0 : index
    %25 = vector.load %arg3[%c72, %c0_17] : memref<160x32xf32, #tpu.memory_space<vmem>>, vector<2x32xf32>
    %cst_18 = arith.constant dense<0.000000e+00> : vector<2x128xf32>
    %26 = tpu.matmul %25, %19, %cst_18 {dimension_numbers = #tpu.dot_dimension_numbers<[1], [0], [0], [1], [0, 0, 1, 1], [], []>} : vector<2x32xf32>, vector<32x128xf32>, vector<2x128xf32> -> vector<2x128xf32>
    %c104 = arith.constant 104 : index
    %c0_19 = arith.constant 0 : index
    %27 = vector.load %arg4[%c104, %c0_19] : memref<256x1xf32, #tpu.memory_space<vmem>>, vector<2x1xf32>
    %28 = vector.broadcast %27 : vector<2x1xf32> to vector<2x128xf32>
    %29 = arith.addf %26, %28 : vector<2x128xf32>
    %c112 = arith.constant 112 : index
    %c0_20 = arith.constant 0 : index
    %30 = vector.load %arg4[%c112, %c0_20] : memref<256x1xf32, #tpu.memory_space<vmem>>, vector<2x1xf32>
    %31 = vector.broadcast %30 : vector<2x1xf32> to vector<2x128xf32>
    %32 = vector.broadcast %0 : vector<1x128xf32> to vector<2x128xf32>
    %33 = arith.mulf %31, %32 : vector<2x128xf32>
    %34 = math.tanh %33 : vector<2x128xf32>
    %c120 = arith.constant 120 : index
    %c0_21 = arith.constant 0 : index
    %35 = vector.load %arg4[%c120, %c0_21] : memref<256x1xf32, #tpu.memory_space<vmem>>, vector<2x1xf32>
    %36 = vector.broadcast %35 : vector<2x1xf32> to vector<2x128xf32>
    %37 = vector.broadcast %0 : vector<1x128xf32> to vector<2x128xf32>
    %38 = arith.mulf %36, %37 : vector<2x128xf32>
    %39 = math.tanh %38 : vector<2x128xf32>
    %40 = arith.mulf %24, %34 : vector<2x128xf32>
    %41 = math.exp %40 : vector<2x128xf32>
    %42 = arith.mulf %2, %41 : vector<2x128xf32>
    %43 = arith.mulf %29, %39 : vector<2x128xf32>
    %44 = arith.addf %42, %43 : vector<2x128xf32>
    %c128 = arith.constant 128 : index
    %c0_22 = arith.constant 0 : index
    %45 = vector.load %arg4[%c128, %c0_22] : memref<256x1xf32, #tpu.memory_space<vmem>>, vector<32x1xf32>
    %46 = vector.broadcast %45 : vector<32x1xf32> to vector<32x128xf32>
    %47 = vector.broadcast %0 : vector<1x128xf32> to vector<32x128xf32>
    %48 = arith.mulf %46, %47 : vector<32x128xf32>
    %c160 = arith.constant 160 : index
    %c0_23 = arith.constant 0 : index
    %49 = vector.load %arg4[%c160, %c0_23] : memref<256x1xf32, #tpu.memory_space<vmem>>, vector<32x1xf32>
    %50 = vector.broadcast %49 : vector<32x1xf32> to vector<32x128xf32>
    %51 = arith.addf %48, %50 : vector<32x128xf32>
    %c80 = arith.constant 80 : index
    %c0_24 = arith.constant 0 : index
    %52 = vector.load %arg3[%c80, %c0_24] : memref<160x32xf32, #tpu.memory_space<vmem>>, vector<32x2xf32>
    %cst_25 = arith.constant dense<0.000000e+00> : vector<32x128xf32>
    %53 = tpu.matmul %52, %44, %cst_25 {dimension_numbers = #tpu.dot_dimension_numbers<[1], [0], [0], [1], [0, 0, 1, 1], [], []>} : vector<32x2xf32>, vector<2x128xf32>, vector<32x128xf32> -> vector<32x128xf32>
    %54 = arith.addf %51, %53 : vector<32x128xf32>
    %55 = math.tanh %54 : vector<32x128xf32>
    %c112_26 = arith.constant 112 : index
    %c0_27 = arith.constant 0 : index
    %56 = vector.load %arg3[%c112_26, %c0_27] : memref<160x32xf32, #tpu.memory_space<vmem>>, vector<32x32xf32>
    %cst_28 = arith.constant dense<0.000000e+00> : vector<32x128xf32>
    %57 = tpu.matmul %56, %55, %cst_28 {dimension_numbers = #tpu.dot_dimension_numbers<[1], [0], [0], [1], [0, 0, 1, 1], [], []>} : vector<32x32xf32>, vector<32x128xf32>, vector<32x128xf32> -> vector<32x128xf32>
    %c192 = arith.constant 192 : index
    %c0_29 = arith.constant 0 : index
    %58 = vector.load %arg4[%c192, %c0_29] : memref<256x1xf32, #tpu.memory_space<vmem>>, vector<32x1xf32>
    %59 = vector.broadcast %58 : vector<32x1xf32> to vector<32x128xf32>
    %60 = arith.addf %57, %59 : vector<32x128xf32>
    %61 = math.tanh %60 : vector<32x128xf32>
    %c144 = arith.constant 144 : index
    %c0_30 = arith.constant 0 : index
    %62 = vector.load %arg3[%c144, %c0_30] : memref<160x32xf32, #tpu.memory_space<vmem>>, vector<2x32xf32>
    %cst_31 = arith.constant dense<0.000000e+00> : vector<2x128xf32>
    %63 = tpu.matmul %62, %61, %cst_31 {dimension_numbers = #tpu.dot_dimension_numbers<[1], [0], [0], [1], [0, 0, 1, 1], [], []>} : vector<2x32xf32>, vector<32x128xf32>, vector<2x128xf32> -> vector<2x128xf32>
    %c224 = arith.constant 224 : index
    %c0_32 = arith.constant 0 : index
    %64 = vector.load %arg4[%c224, %c0_32] : memref<256x1xf32, #tpu.memory_space<vmem>>, vector<2x1xf32>
    %65 = vector.broadcast %64 : vector<2x1xf32> to vector<2x128xf32>
    %66 = arith.addf %63, %65 : vector<2x128xf32>
    %c152 = arith.constant 152 : index
    %c0_33 = arith.constant 0 : index
    %67 = vector.load %arg3[%c152, %c0_33] : memref<160x32xf32, #tpu.memory_space<vmem>>, vector<2x32xf32>
    %cst_34 = arith.constant dense<0.000000e+00> : vector<2x128xf32>
    %68 = tpu.matmul %67, %61, %cst_34 {dimension_numbers = #tpu.dot_dimension_numbers<[1], [0], [0], [1], [0, 0, 1, 1], [], []>} : vector<2x32xf32>, vector<32x128xf32>, vector<2x128xf32> -> vector<2x128xf32>
    %c232 = arith.constant 232 : index
    %c0_35 = arith.constant 0 : index
    %69 = vector.load %arg4[%c232, %c0_35] : memref<256x1xf32, #tpu.memory_space<vmem>>, vector<2x1xf32>
    %70 = vector.broadcast %69 : vector<2x1xf32> to vector<2x128xf32>
    %71 = arith.addf %68, %70 : vector<2x128xf32>
    %c240 = arith.constant 240 : index
    %c0_36 = arith.constant 0 : index
    %72 = vector.load %arg4[%c240, %c0_36] : memref<256x1xf32, #tpu.memory_space<vmem>>, vector<2x1xf32>
    %73 = vector.broadcast %72 : vector<2x1xf32> to vector<2x128xf32>
    %74 = vector.broadcast %0 : vector<1x128xf32> to vector<2x128xf32>
    %75 = arith.mulf %73, %74 : vector<2x128xf32>
    %76 = math.tanh %75 : vector<2x128xf32>
    %c248 = arith.constant 248 : index
    %c0_37 = arith.constant 0 : index
    %77 = vector.load %arg4[%c248, %c0_37] : memref<256x1xf32, #tpu.memory_space<vmem>>, vector<2x1xf32>
    %78 = vector.broadcast %77 : vector<2x1xf32> to vector<2x128xf32>
    %79 = vector.broadcast %0 : vector<1x128xf32> to vector<2x128xf32>
    %80 = arith.mulf %78, %79 : vector<2x128xf32>
    %81 = math.tanh %80 : vector<2x128xf32>
    %82 = arith.mulf %66, %76 : vector<2x128xf32>
    %83 = math.exp %82 : vector<2x128xf32>
    %84 = arith.mulf %1, %83 : vector<2x128xf32>
    %85 = arith.mulf %71, %81 : vector<2x128xf32>
    %86 = arith.addf %84, %85 : vector<2x128xf32>
    %c0_38 = arith.constant 0 : index
    %c0_39 = arith.constant 0 : index
    %87 = vector.load %arg5[%c0_38, %c0_39] : memref<4x128xf32, #tpu.memory_space<vmem>>, vector<2x128xf32>
    tpu.vector_store %arg5[%c0_38, %c0_39], %86 {strides = array<i32>} : memref<4x128xf32, #tpu.memory_space<vmem>>, vector<2x128xf32>,
    %c2_40 = arith.constant 2 : index
    %c0_41 = arith.constant 0 : index
    %88 = vector.load %arg5[%c2_40, %c0_41] : memref<4x128xf32, #tpu.memory_space<vmem>>, vector<2x128xf32>
    tpu.vector_store %arg5[%c2_40, %c0_41], %44 {strides = array<i32>} : memref<4x128xf32, #tpu.memory_space<vmem>>, vector<2x128xf32>,
    return
  }
  func.func @transform_0(%arg0: i32) -> (i32, i32) {
    %c0_i32 = arith.constant 0 : i32
    %c0_i32_0 = arith.constant 0 : i32
    return %c0_i32, %arg0 : i32, i32
  }
  func.func @transform_1(%arg0: i32) -> (i32, i32) {
    %c0_i32 = arith.constant 0 : i32
    %c0_i32_0 = arith.constant 0 : i32
    return %c0_i32, %arg0 : i32, i32
  }
  func.func @transform_2(%arg0: i32) -> (i32, i32) {
    %c0_i32 = arith.constant 0 : i32
    %c0_i32_0 = arith.constant 0 : i32
    %c0_i32_1 = arith.constant 0 : i32
    return %c0_i32, %c0_i32_0 : i32, i32
  }
  func.func @transform_3(%arg0: i32) -> (i32, i32) {
    %c0_i32 = arith.constant 0 : i32
    %c0_i32_0 = arith.constant 0 : i32
    %c0_i32_1 = arith.constant 0 : i32
    return %c0_i32, %c0_i32_0 : i32, i32
  }
  func.func @transform_4(%arg0: i32) -> (i32, i32) {
    %c0_i32 = arith.constant 0 : i32
    %c0_i32_0 = arith.constant 0 : i32
    return %c0_i32, %arg0 : i32, i32
  }
}

module attributes {stable_mosaic.version = 11 : i64} {
  func.func @kernel(%arg0: i32, %arg1: memref<4x128xf32, #tpu.memory_space<vmem>>, %arg2: memref<1x128xf32, #tpu.memory_space<vmem>>, %arg3: memref<160x32xf32, #tpu.memory_space<vmem>>, %arg4: memref<256x1xf32, #tpu.memory_space<vmem>>, %arg5: memref<4x128xf32, #tpu.memory_space<vmem>>) attributes {dimension_semantics = [#tpu.dimension_semantics<parallel>], iteration_bounds = array<i64: 1>, scalar_prefetch = 0 : i64, scratch_operands = 0 : i64, tpu.core_type = #tpu.core_type<tc>, window_params = [{transform_indices = @transform_0, window_bounds = array<i64: 4, 128>}, {transform_indices = @transform_1, window_bounds = array<i64: 1, 128>}, {pipeline_mode = #tpu.pipeline_mode<synchronous>, transform_indices = @transform_2, window_bounds = array<i64: 160, 32>}, {pipeline_mode = #tpu.pipeline_mode<synchronous>, transform_indices = @transform_3, window_bounds = array<i64: 256, 1>}, {transform_indices = @transform_4, window_bounds = array<i64: 4, 128>}]} {
    %c0 = arith.constant 0 : index
    %c0_0 = arith.constant 0 : index
    %0 = vector.load %arg2[%c0, %c0_0] : memref<1x128xf32, #tpu.memory_space<vmem>>, vector<1x128xf32>
    %c0_1 = arith.constant 0 : index
    %c0_2 = arith.constant 0 : index
    %1 = vector.load %arg1[%c0_1, %c0_2] : memref<4x128xf32, #tpu.memory_space<vmem>>, vector<2x128xf32>
    %c2 = arith.constant 2 : index
    %c0_3 = arith.constant 0 : index
    %2 = vector.load %arg1[%c2, %c0_3] : memref<4x128xf32, #tpu.memory_space<vmem>>, vector<2x128xf32>
    %c0_4 = arith.constant 0 : index
    %c0_5 = arith.constant 0 : index
    %3 = vector.load %arg4[%c0_4, %c0_5] : memref<256x1xf32, #tpu.memory_space<vmem>>, vector<32x1xf32>
    %4 = vector.broadcast %3 : vector<32x1xf32> to vector<32x128xf32>
    %5 = vector.broadcast %0 : vector<1x128xf32> to vector<32x128xf32>
    %6 = arith.mulf %4, %5 : vector<32x128xf32>
    %c32 = arith.constant 32 : index
    %c0_6 = arith.constant 0 : index
    %7 = vector.load %arg4[%c32, %c0_6] : memref<256x1xf32, #tpu.memory_space<vmem>>, vector<32x1xf32>
    %8 = vector.broadcast %7 : vector<32x1xf32> to vector<32x128xf32>
    %9 = arith.addf %6, %8 : vector<32x128xf32>
    %c0_7 = arith.constant 0 : index
    %c0_8 = arith.constant 0 : index
    %10 = vector.load %arg3[%c0_7, %c0_8] : memref<160x32xf32, #tpu.memory_space<vmem>>, vector<32x2xf32>
    %cst = arith.constant dense<0.000000e+00> : vector<32x128xf32>
    %11 = tpu.matmul %10, %1, %cst {dimension_numbers = #tpu.dot_dimension_numbers<[1], [0], [0], [1], [0, 0, 1, 1], [], []>} : vector<32x2xf32>, vector<2x128xf32>, vector<32x128xf32> -> vector<32x128xf32>
    %12 = arith.addf %9, %11 : vector<32x128xf32>
    %13 = math.tanh %12 : vector<32x128xf32>
    %c32_9 = arith.constant 32 : index
    %c0_10 = arith.constant 0 : index
    %14 = vector.load %arg3[%c32_9, %c0_10] : memref<160x32xf32, #tpu.memory_space<vmem>>, vector<32x32xf32>
    %cst_11 = arith.constant dense<0.000000e+00> : vector<32x128xf32>
    %15 = tpu.matmul %14, %13, %cst_11 {dimension_numbers = #tpu.dot_dimension_numbers<[1], [0], [0], [1], [0, 0, 1, 1], [], []>} : vector<32x32xf32>, vector<32x128xf32>, vector<32x128xf32> -> vector<32x128xf32>
    %c64 = arith.constant 64 : index
    %c0_12 = arith.constant 0 : index
    %16 = vector.load %arg4[%c64, %c0_12] : memref<256x1xf32, #tpu.memory_space<vmem>>, vector<32x1xf32>
    %17 = vector.broadcast %16 : vector<32x1xf32> to vector<32x128xf32>
    %18 = arith.addf %15, %17 : vector<32x128xf32>
    %19 = math.tanh %18 : vector<32x128xf32>
    %c64_13 = arith.constant 64 : index
    %c0_14 = arith.constant 0 : index
    %20 = vector.load %arg3[%c64_13, %c0_14] : memref<160x32xf32, #tpu.memory_space<vmem>>, vector<2x32xf32>
    %cst_15 = arith.constant dense<0.000000e+00> : vector<2x128xf32>
    %21 = tpu.matmul %20, %19, %cst_15 {dimension_numbers = #tpu.dot_dimension_numbers<[1], [0], [0], [1], [0, 0, 1, 1], [], []>} : vector<2x32xf32>, vector<32x128xf32>, vector<2x128xf32> -> vector<2x128xf32>
    %c96 = arith.constant 96 : index
    %c0_16 = arith.constant 0 : index
    %22 = vector.load %arg4[%c96, %c0_16] : memref<256x1xf32, #tpu.memory_space<vmem>>, vector<2x1xf32>
    %23 = vector.broadcast %22 : vector<2x1xf32> to vector<2x128xf32>
    %24 = arith.addf %21, %23 : vector<2x128xf32>
    %c72 = arith.constant 72 : index
    %c0_17 = arith.constant 0 : index
    %25 = vector.load %arg3[%c72, %c0_17] : memref<160x32xf32, #tpu.memory_space<vmem>>, vector<2x32xf32>
    %cst_18 = arith.constant dense<0.000000e+00> : vector<2x128xf32>
    %26 = tpu.matmul %25, %19, %cst_18 {dimension_numbers = #tpu.dot_dimension_numbers<[1], [0], [0], [1], [0, 0, 1, 1], [], []>} : vector<2x32xf32>, vector<32x128xf32>, vector<2x128xf32> -> vector<2x128xf32>
    %c104 = arith.constant 104 : index
    %c0_19 = arith.constant 0 : index
    %27 = vector.load %arg4[%c104, %c0_19] : memref<256x1xf32, #tpu.memory_space<vmem>>, vector<2x1xf32>
    %28 = vector.broadcast %27 : vector<2x1xf32> to vector<2x128xf32>
    %29 = arith.addf %26, %28 : vector<2x128xf32>
    %c112 = arith.constant 112 : index
    %c0_20 = arith.constant 0 : index
    %30 = vector.load %arg4[%c112, %c0_20] : memref<256x1xf32, #tpu.memory_space<vmem>>, vector<2x1xf32>
    %31 = vector.broadcast %30 : vector<2x1xf32> to vector<2x128xf32>
    %32 = vector.broadcast %0 : vector<1x128xf32> to vector<2x128xf32>
    %33 = arith.mulf %31, %32 : vector<2x128xf32>
    %34 = math.tanh %33 : vector<2x128xf32>
    %c120 = arith.constant 120 : index
    %c0_21 = arith.constant 0 : index
    %35 = vector.load %arg4[%c120, %c0_21] : memref<256x1xf32, #tpu.memory_space<vmem>>, vector<2x1xf32>
    %36 = vector.broadcast %35 : vector<2x1xf32> to vector<2x128xf32>
    %37 = vector.broadcast %0 : vector<1x128xf32> to vector<2x128xf32>
    %38 = arith.mulf %36, %37 : vector<2x128xf32>
    %39 = math.tanh %38 : vector<2x128xf32>
    %40 = arith.mulf %24, %34 : vector<2x128xf32>
    %41 = math.exp %40 : vector<2x128xf32>
    %42 = arith.mulf %2, %41 : vector<2x128xf32>
    %43 = arith.mulf %29, %39 : vector<2x128xf32>
    %44 = arith.addf %42, %43 : vector<2x128xf32>
    %c128 = arith.constant 128 : index
    %c0_22 = arith.constant 0 : index
    %45 = vector.load %arg4[%c128, %c0_22] : memref<256x1xf32, #tpu.memory_space<vmem>>, vector<32x1xf32>
    %46 = vector.broadcast %45 : vector<32x1xf32> to vector<32x128xf32>
    %47 = vector.broadcast %0 : vector<1x128xf32> to vector<32x128xf32>
    %48 = arith.mulf %46, %47 : vector<32x128xf32>
    %c160 = arith.constant 160 : index
    %c0_23 = arith.constant 0 : index
    %49 = vector.load %arg4[%c160, %c0_23] : memref<256x1xf32, #tpu.memory_space<vmem>>, vector<32x1xf32>
    %50 = vector.broadcast %49 : vector<32x1xf32> to vector<32x128xf32>
    %51 = arith.addf %48, %50 : vector<32x128xf32>
    %c80 = arith.constant 80 : index
    %c0_24 = arith.constant 0 : index
    %52 = vector.load %arg3[%c80, %c0_24] : memref<160x32xf32, #tpu.memory_space<vmem>>, vector<32x2xf32>
    %cst_25 = arith.constant dense<0.000000e+00> : vector<32x128xf32>
    %53 = tpu.matmul %52, %44, %cst_25 {dimension_numbers = #tpu.dot_dimension_numbers<[1], [0], [0], [1], [0, 0, 1, 1], [], []>} : vector<32x2xf32>, vector<2x128xf32>, vector<32x128xf32> -> vector<32x128xf32>
    %54 = arith.addf %51, %53 : vector<32x128xf32>
    %55 = math.tanh %54 : vector<32x128xf32>
    %c112_26 = arith.constant 112 : index
    %c0_27 = arith.constant 0 : index
    %56 = vector.load %arg3[%c112_26, %c0_27] : memref<160x32xf32, #tpu.memory_space<vmem>>, vector<32x32xf32>
    %cst_28 = arith.constant dense<0.000000e+00> : vector<32x128xf32>
    %57 = tpu.matmul %56, %55, %cst_28 {dimension_numbers = #tpu.dot_dimension_numbers<[1], [0], [0], [1], [0, 0, 1, 1], [], []>} : vector<32x32xf32>, vector<32x128xf32>, vector<32x128xf32> -> vector<32x128xf32>
    %c192 = arith.constant 192 : index
    %c0_29 = arith.constant 0 : index
    %58 = vector.load %arg4[%c192, %c0_29] : memref<256x1xf32, #tpu.memory_space<vmem>>, vector<32x1xf32>
    %59 = vector.broadcast %58 : vector<32x1xf32> to vector<32x128xf32>
    %60 = arith.addf %57, %59 : vector<32x128xf32>
    %61 = math.tanh %60 : vector<32x128xf32>
    %c144 = arith.constant 144 : index
    %c0_30 = arith.constant 0 : index
    %62 = vector.load %arg3[%c144, %c0_30] : memref<160x32xf32, #tpu.memory_space<vmem>>, vector<2x32xf32>
    %cst_31 = arith.constant dense<0.000000e+00> : vector<2x128xf32>
    %63 = tpu.matmul %62, %61, %cst_31 {dimension_numbers = #tpu.dot_dimension_numbers<[1], [0], [0], [1], [0, 0, 1, 1], [], []>} : vector<2x32xf32>, vector<32x128xf32>, vector<2x128xf32> -> vector<2x128xf32>
    %c224 = arith.constant 224 : index
    %c0_32 = arith.constant 0 : index
    %64 = vector.load %arg4[%c224, %c0_32] : memref<256x1xf32, #tpu.memory_space<vmem>>, vector<2x1xf32>
    %65 = vector.broadcast %64 : vector<2x1xf32> to vector<2x128xf32>
    %66 = arith.addf %63, %65 : vector<2x128xf32>
    %c152 = arith.constant 152 : index
    %c0_33 = arith.constant 0 : index
    %67 = vector.load %arg3[%c152, %c0_33] : memref<160x32xf32, #tpu.memory_space<vmem>>, vector<2x32xf32>
    %cst_34 = arith.constant dense<0.000000e+00> : vector<2x128xf32>
    %68 = tpu.matmul %67, %61, %cst_34 {dimension_numbers = #tpu.dot_dimension_numbers<[1], [0], [0], [1], [0, 0, 1, 1], [], []>} : vector<2x32xf32>, vector<32x128xf32>, vector<2x128xf32> -> vector<2x128xf32>
    %c232 = arith.constant 232 : index
    %c0_35 = arith.constant 0 : index
    %69 = vector.load %arg4[%c232, %c0_35] : memref<256x1xf32, #tpu.memory_space<vmem>>, vector<2x1xf32>
    %70 = vector.broadcast %69 : vector<2x1xf32> to vector<2x128xf32>
    %71 = arith.addf %68, %70 : vector<2x128xf32>
    %c240 = arith.constant 240 : index
    %c0_36 = arith.constant 0 : index
    %72 = vector.load %arg4[%c240, %c0_36] : memref<256x1xf32, #tpu.memory_space<vmem>>, vector<2x1xf32>
    %73 = vector.broadcast %72 : vector<2x1xf32> to vector<2x128xf32>
    %74 = vector.broadcast %0 : vector<1x128xf32> to vector<2x128xf32>
    %75 = arith.mulf %73, %74 : vector<2x128xf32>
    %76 = math.tanh %75 : vector<2x128xf32>
    %c248 = arith.constant 248 : index
    %c0_37 = arith.constant 0 : index
    %77 = vector.load %arg4[%c248, %c0_37] : memref<256x1xf32, #tpu.memory_space<vmem>>, vector<2x1xf32>
    %78 = vector.broadcast %77 : vector<2x1xf32> to vector<2x128xf32>
    %79 = vector.broadcast %0 : vector<1x128xf32> to vector<2x128xf32>
    %80 = arith.mulf %78, %79 : vector<2x128xf32>
    %81 = math.tanh %80 : vector<2x128xf32>
    %82 = arith.mulf %66, %76 : vector<2x128xf32>
    %83 = math.exp %82 : vector<2x128xf32>
    %84 = arith.mulf %1, %83 : vector<2x128xf32>
    %85 = arith.mulf %71, %81 : vector<2x128xf32>
    %86 = arith.addf %84, %85 : vector<2x128xf32>
    %c0_38 = arith.constant 0 : index
    %c0_39 = arith.constant 0 : index
    %87 = vector.load %arg5[%c0_38, %c0_39] : memref<4x128xf32, #tpu.memory_space<vmem>>, vector<2x128xf32>
    tpu.vector_store %arg5[%c0_38, %c0_39], %86 {strides = array<i32>} : memref<4x128xf32, #tpu.memory_space<vmem>>, vector<2x128xf32>,
    %c2_40 = arith.constant 2 : index
    %c0_41 = arith.constant 0 : index
    %88 = vector.load %arg5[%c2_40, %c0_41] : memref<4x128xf32, #tpu.memory_space<vmem>>, vector<2x128xf32>
    tpu.vector_store %arg5[%c2_40, %c0_41], %44 {strides = array<i32>} : memref<4x128xf32, #tpu.memory_space<vmem>>, vector<2x128xf32>,
    return
  }
  func.func @transform_0(%arg0: i32) -> (i32, i32) {
    %c0_i32 = arith.constant 0 : i32
    %c0_i32_0 = arith.constant 0 : i32
    return %c0_i32, %arg0 : i32, i32
  }
  func.func @transform_1(%arg0: i32) -> (i32, i32) {
    %c0_i32 = arith.constant 0 : i32
    %c0_i32_0 = arith.constant 0 : i32
    return %c0_i32, %arg0 : i32, i32
  }
  func.func @transform_2(%arg0: i32) -> (i32, i32) {
    %c0_i32 = arith.constant 0 : i32
    %c0_i32_0 = arith.constant 0 : i32
    %c0_i32_1 = arith.constant 0 : i32
    return %c0_i32, %c0_i32_0 : i32, i32
  }
  func.func @transform_3(%arg0: i32) -> (i32, i32) {
    %c0_i32 = arith.constant 0 : i32
    %c0_i32_0 = arith.constant 0 : i32
    %c0_i32_1 = arith.constant 0 : i32
    return %c0_i32, %c0_i32_0 : i32, i32
  }
  func.func @transform_4(%arg0: i32) -> (i32, i32) {
    %c0_i32 = arith.constant 0 : i32
    %c0_i32_0 = arith.constant 0 : i32
    return %c0_i32, %arg0 : i32, i32
  }
}

</mosaic_0001>

<bundles_post_ra>
// kernel: tpu_custom_call.1
= control target key start
LH: loop header
LB: loop body
LE: loop exit
PB: predicated region body
PF: predicated region fallthrough
CT: control target
= control target key end

     0   :  { %vm100_vm0 = vcmask 1041408   ;;  %vm87_vm1 = vcmask 15360   ;;  %v1276_v5 = vmov 0   ;;  %s1542_s0 = inlined_call_operand.vmem [shape: f32[4,128], index: 0, kind: input, shape index: {}]   ;;  %s1543_s1 = inlined_call_operand.vmem [shape: f32[1,128], index: 1, kind: input, shape index: {}]   ;;  %s1544_s2 = inlined_call_operand.vmem [shape: f32[160,32], index: 2, kind: input, shape index: {}]   ;;  %s1545_s3 = inlined_call_operand.vmem [shape: f32[256,1], index: 3, kind: input, shape index: {}]   ;;  %s1546_s4 = inlined_call_operand.hbm [shape: f32[4,128], index: 4, kind: output, shape index: {}]  }
   0x1   :  { %v1309_v0 = vld [vmem:[%s1542_s0] sm:$0x3]  ;;  %v84_v2 = vld [vmem:[%s1544_s2 + $0x8] sm:$0xff]  ;;  %v85_v3 = vld [vmem:[%s1544_s2 + $0x10] sm:$0xff]  ;;  %1207 = vset.pattern.permute.xlu1 %v1276_v5  ;;  %1206 = vset.pattern.permute.xlu0 %v1276_v5 }
   0x2   :  { %v83_v1 = vld [vmem:[%s1544_s2] sm:$0xff]  ;;  %1073 = vmatprep.subr.msk.mxu1 %vm100_vm0, %v1309_v0  ;;  %v86_v7 = vld [vmem:[%s1544_s2 + $0x18] sm:$0xff]  ;;  %v56_v8 = vld [vmem:[%s1545_s3 + $0x28] sm:$0xff] }
   0x3   :  { %1075 = vmatprep.mubr.msk.f32.mxu1 %vm87_vm1, %v83_v1  ;;  %v55_v4 = vld [vmem:[%s1545_s3 + $0x20] sm:$0xff]  ;;  %1074 = vmatpush3.msk.msra.mxu1 %vm100_vm0, %v1309_v0  ;;  %v22_v9 = vld [vmem:[%s1545_s3 + $0x8] sm:$0xff]  ;;  %v24_v10 = vld [vmem:[%s1545_s3 + $0x18] sm:$0xff] }
   0x4   :  { %v21_v6 = vld [vmem:[%s1545_s3] sm:$0xff]  ;;  %1076 = vmatmul.mubr.msk.f32.vlgmr.msra.gmra.mrb[0].mxu1 %vm87_vm1, %v84_v2  ;;  %61 = vperm.xlu1 %1207, %v55_v4   ;;  %v23_v11 = vld [vmem:[%s1545_s3 + $0x10] sm:$0xff] }
   0x5   :  { %1078 = vmatprep.mubr.msk.f32.mxu1 %vm87_vm1, %v85_v3  ;;  %27 = vperm.xlu0 %1206, %v21_v6  }
   0x8   :  { %1079 = vmatmul.mubr.msk.f32.gmra.mrb[2].mxu1 %vm87_vm1, %v86_v7  ;;  %66 = vperm.xlu1 %1207, %v56_v8  }
   0x9   :  { %32 = vperm.xlu0 %1206, %v22_v9  }
   0xc   :  { %42 = vperm.xlu1 %1207, %v24_v10  }
   0xd   :  { %9 = vsyncpa [#allocation3], 0  ;;  %37 = vperm.xlu0 %1206, %v23_v11   ;;  %v58_v12 = vld [vmem:[%s1545_s3 + $0x38] sm:$0xff]  ;;  %v57_v13 = vld [vmem:[%s1545_s3 + $0x30] sm:$0xff]  ;;  %vm225_vm2 = vcmask 261120   ;;  %v1277_v10 = vmov 0.0|0.0  }
   0xe   :  { %v202_v14 = vld [vmem:[%s1545_s3 + $0x48] sm:$0xff]  ;;  %v201_v15 = vld [vmem:[%s1545_s3 + $0x40] sm:$0xff]  ;;  %v204_v16 = vld [vmem:[%s1545_s3 + $0x58] sm:$0xff]  ;;  %1169 = vmatprep.subr.bf16.mxu0 %v1277_v10  ;;  %vm1278_vm3 = vmmov 0   ;;  %v1279_v11 = vmov 0.0  }
   0xf   :  { %v203_v17 = vld [vmem:[%s1545_s3 + $0x50] sm:$0xff]  ;;  %v328_v18 = vld [vmem:[%s1545_s3 + $0x60] sm:$0x3]  ;;  %v408_v20 = vld [vmem:[%s1545_s3 + $0x68] sm:$0x3]  ;;  %1103 = vmatprep.mubr.msk.f32.mxu0 %vm1278_vm3, %v1279_v11 }
  0x10   :  { %76 = vperm.xlu1 %1207, %v58_v12   ;;  %v487_v19 = vld [vmem:[%s1545_s3 + $0x70] sm:$0x3]  ;;  %v495_v21 = vld [vmem:[%s1545_s3 + $0x78] sm:$0x3]  ;;  %v510_v22 = vld [vmem:[%s1545_s3 + $0x88] sm:$0xff] }
  0x11   :  { %71 = vperm.xlu0 %1206, %v57_v13   ;;  %v509_v23 = vld [vmem:[%s1545_s3 + $0x80] sm:$0xff]  ;;  %v538_v24 = vld [vmem:[%s1545_s3 + $0xa8] sm:$0xff]  ;;  %v512_v26 = vld [vmem:[%s1545_s3 + $0x98] sm:$0xff] }
  0x12   :  { %v537_v25 = vld [vmem:[%s1545_s3 + $0xa0] sm:$0xff]  ;;  %v511_v27 = vld [vmem:[%s1545_s3 + $0x90] sm:$0xff]  ;;  %v540_v28 = vld [vmem:[%s1545_s3 + $0xb8] sm:$0xff] }
  0x13   :  { %v539_v29 = vld [vmem:[%s1545_s3 + $0xb0] sm:$0xff]  ;;  %v682_v30 = vld [vmem:[%s1545_s3 + $0xc8] sm:$0xff]  ;;  %v681_v31 = vld [vmem:[%s1545_s3 + $0xc0] sm:$0xff] }
  0x14   :  { %212 = vperm.xlu1 %1207, %v202_v14   ;;  %v684_v32 = vld [vmem:[%s1545_s3 + $0xd8] sm:$0xff]  ;;  %v683_v33 = vld [vmem:[%s1545_s3 + $0xd0] sm:$0xff]  ;;  %v807_v34 = vld [vmem:[%s1545_s3 + $0xe0] sm:$0x3] }
  0x15   :  { %207 = vperm.xlu0 %1206, %v201_v15   ;;  %v966_v35 = vld [vmem:[%s1545_s3 + $0xf0] sm:$0x3]  ;;  %v887_v36 = vld [vmem:[%s1545_s3 + $0xe8] sm:$0x3]  ;;  %v974_v37 = vld [vmem:[%s1545_s3 + $0xf8] sm:$0x3] }
  0x16   :  { %v197_v38 = vld [vmem:[%s1544_s2 + $0x20] sm:$0xff]  ;;  %v198_v7 = vld [vmem:[%s1544_s2 + $0x28] sm:$0xff]  ;;  %v199_v8 = vld [vmem:[%s1544_s2 + $0x30] sm:$0xff] }
  0x17   :  { %1089 = vmatprep.mubr.msk.f32.mxu1 %vm225_vm2, %v197_v38  ;;  %v1434_v43 = vld [vmem:[%s1543_s1] ss:$0 sm:$0xff]  ;;  %v200_v9 = vld [vmem:[%s1544_s2 + $0x38] sm:$0xff] }
  0x18   :  { %222 = vperm.xlu1 %1207, %v204_v16  }
  0x19   :  { %217 = vperm.xlu0 %1206, %v203_v17  }
  0x1c   :  { %331 = vperm.xlu1 %1207, %v328_v18  }
  0x1d   :  { %490 = vperm.xlu0 %1206, %v487_v19  }
  0x20   :  { %411 = vperm.xlu1 %1207, %v408_v20  }
  0x21   :  { %498 = vperm.xlu0 %1206, %v495_v21  }
  0x24   :  { %520 = vperm.xlu1 %1207, %v510_v22  }
  0x25   :  { %515 = vperm.xlu0 %1206, %v509_v23  }
  0x28   :  { %548 = vperm.xlu1 %1207, %v538_v24  }
  0x29   :  { %543 = vperm.xlu0 %1206, %v537_v25  }
  0x2c   :  { %530 = vperm.xlu1 %1207, %v512_v26  }
  0x2d   :  { %525 = vperm.xlu0 %1206, %v511_v27  }
  0x30   :  { %558 = vperm.xlu1 %1207, %v540_v28  }
  0x31   :  { %553 = vperm.xlu0 %1206, %v539_v29  }
  0x34   :  { %692 = vperm.xlu1 %1207, %v682_v30   ;;  %v327_v30 = vld [vmem:[%s1544_s2 + $0x40] sm:$0x3] }
  0x35   :  { %687 = vperm.xlu0 %1206, %v681_v31   ;;  %v407_v31 = vld [vmem:[%s1544_s2 + $0x48] sm:$0x3] }
  0x38   :  { %702 = vperm.xlu1 %1207, %v684_v32   ;;  %v565_v32 = vld [vmem:[%s1544_s2 + $0x50] sm:$0xff] }
  0x39   :  { %697 = vperm.xlu0 %1206, %v683_v33  }
  0x3c   :  { %810 = vperm.xlu1 %1207, %v807_v34  }
  0x3d   :  { %969 = vperm.xlu0 %1206, %v966_v35  }
  0x40   :  { %890 = vperm.xlu1 %1207, %v887_v36  }
  0x41   :  { %977 = vperm.xlu0 %1206, %v974_v37  }
  0x83   :  { %v62_v39 = vpop.permute.xlu1 %61 }
  0x84   :  { %v28_v40 = vpop.permute.xlu0 %27 }
  0x85   :  { %v51_v45 = vmul.f32 %v1434_v43, %v28_v40 }
  0x87   :  { %v67_v41 = vpop.permute.xlu1 %66  ;;  %v79_v52 = vadd.f32 %v62_v39, %v51_v45 }
  0x88   :  { %v33_v42 = vpop.permute.xlu0 %32 }
  0x89   :  { %v52_v44 = vmul.f32 %v1434_v43, %v33_v42 }
  0x8b   :  { %v43_v46 = vpop.permute.xlu1 %42  ;;  %v80_v49 = vadd.f32 %v67_v41, %v52_v44 }
  0x8c   :  { %v38_v47 = vpop.permute.xlu0 %37  ;;  %v54_v48 = vmul.f32 %v1434_v43, %v43_v46 }
  0x8d   :  { %v53_v50 = vmul.f32 %v1434_v43, %v38_v47 }
  0x8f   :  { %v77_v55 = vpop.permute.xlu1 %76 }
  0x90   :  { %v82_v57 = vadd.f32 %v77_v55, %v54_v48  ;;  %v72_v58 = vpop.permute.xlu0 %71  ;;  %v566_v55 = vld [vmem:[%s1544_s2 + $0x58] sm:$0xff] }
  0x91   :  { %v81_v59 = vadd.f32 %v72_v58, %v53_v50  ;;  %v677_v58 = vld [vmem:[%s1544_s2 + $0x70] sm:$0xff] }
  0x93   :  { %v213_v12 = vpop.permute.xlu1 %212 }
  0x94   :  { %v208_v13 = vpop.permute.xlu0 %207 }
  0x97   :  { %v223_v18 = vpop.permute.xlu1 %222 }
  0x98   :  { %v218_v20 = vpop.permute.xlu0 %217 }
  0x9b   :  { %v332_v37 = vpop.permute.xlu1 %331 }
  0x9c   :  { %v491_v33 = vpop.permute.xlu0 %490 }
  0x9d   :  { %v493_v34 = vmul.f32 %v1434_v43, %v491_v33 }
  0x9f   :  { %v412_v38 = vpop.permute.xlu1 %411 }
  0xa0   :  { %v499_v35 = vpop.permute.xlu0 %498 }
  0xa1   :  { %v501_v36 = vmul.f32 %v1434_v43, %v499_v35 }
  0xd7   :  { %v1077_v51 = vpop.f32.mrb[0].mxu1 }
  0xd8   :  { %v190_v53 = vadd.f32 %v1077_v51, %v80_v49  ;;  %v170_v54 = vpop.f32.mrb[1].mxu1  ;;  %v20_v51 = vld [vmem:[%s1542_s0 + $0x2] sm:$0x3] }
  0xd9   :  { %v189_v56 = vadd.f32 %v170_v54, %v79_v52 }
  0xda   :  { %1208 = vtanh.f32 %v190_v53 }
  0xdb   :  { %1210 = vtanh.f32 %v189_v56  ;;  %v1080_v60 = vpop.f32.mrb[2].mxu1  ;;  %v567_v56 = vld [vmem:[%s1544_s2 + $0x60] sm:$0xff] }
  0xdc   :  { %v192_v61 = vadd.f32 %v1080_v60, %v82_v57  ;;  %v180_v62 = vpop.f32.mrb[3].mxu1  ;;  %v568_v57 = vld [vmem:[%s1544_s2 + $0x68] sm:$0xff]  ;;  %v516_v60 = vpop.permute.xlu0 %515 }
  0xdd   :  { %v191_v63 = vadd.f32 %v180_v62, %v81_v59  ;;  %v521_v59 = vpop.permute.xlu1 %520 }
  0xde   :  { %1212 = vtanh.f32 %v192_v61 }
  0xdf   :  { %1214 = vtanh.f32 %v191_v63  ;;  %v534_v63 = vmul.f32 %v1434_v43, %v521_v59 }
  0xe0   :  { %v544_v62 = vpop.permute.xlu0 %543 }
  0xe1   :  { %v549_v61 = vpop.permute.xlu1 %548 }
  0xe4   :  { %v1209_v1 = vpop.eup %1208 }
  0xe5   :  { %v1211_v2 = vpop.eup %1210 }
  0xe6   :  { %v1161_v3 = vpack.c.bf16 %v1209_v1, %v1211_v2  ;;  %v533_v1 = vmul.f32 %v1434_v43, %v516_v60  ;;  %v531_v2 = vpop.permute.xlu1 %530 }
  0xe8   :  { %v1213_v4 = vpop.eup %1212  ;;  %1162 = vmatprep.subr.bf16.mxu1 %v1161_v3 }
  0xe9   :  { %v1215_v5 = vpop.eup %1214  ;;  %1164 = vmatpush3.bf16.msra.mxu1 %v1161_v3  ;;  %v526_v3 = vpop.permute.xlu0 %525 }
  0xea   :  { %v1165_v6 = vpack.c.bf16 %v1213_v4, %v1215_v5  ;;  %v562_v4 = vadd.f32 %v549_v61, %v534_v63  ;;  %v536_v5 = vmul.f32 %v1434_v43, %v531_v2 }
  0xec   :  { %1166 = vmatprep.subr.bf16.mxu1 %v1165_v6 }
  0xed   :  { %1168 = vmatpush3.bf16.msra.mxu1 %v1165_v6  ;;  %v561_v6 = vadd.f32 %v544_v62, %v533_v1 }
  0xee   :  { %1175 = vmatprep.subr.bf16.mxu1 %v1277_v10 }
  0xf0   :  { %1090 = vmatmul.mubr.msk.f32.vlgmr.msra.gmra.mrb[4].mxu1 %vm225_vm2, %v198_v7  ;;  %v535_v7 = vmul.f32 %v1434_v43, %v526_v3 }
  0xf1   :  { %1092 = vmatprep.mubr.msk.f32.mxu1 %vm225_vm2, %v199_v8 }
  0xf4   :  { %1093 = vmatmul.mubr.msk.f32.gmra.mrb[6].mxu1 %vm225_vm2, %v200_v9 }
  0xf5   :  { %1114 = vmatprep.mubr.msk.f32.mxu1 %vm1278_vm3, %v1279_v11 }
 0x1c3   :  { %v1091_v14 = vpop.f32.mrb[4].mxu1 }
 0x1c4   :  { %v310_v15 = vadd.f32 %v1091_v14, %v213_v12  ;;  %v304_v16 = vpop.f32.mrb[5].mxu1 }
 0x1c5   :  { %v305_v17 = vadd.f32 %v304_v16, %v208_v13  ;;  %v559_v13 = vpop.permute.xlu1 %558  ;;  %v554_v16 = vpop.permute.xlu0 %553 }
 0x1c6   :  { %1216 = vtanh.f32 %v310_v15  ;;  %v564_v15 = vadd.f32 %v559_v13, %v536_v5 }
 0x1c7   :  { %1218 = vtanh.f32 %v305_v17  ;;  %v1094_v19 = vpop.f32.mrb[6].mxu1  ;;  %v563_v17 = vadd.f32 %v554_v16, %v535_v7 }
 0x1c8   :  { %v320_v21 = vadd.f32 %v1094_v19, %v223_v18  ;;  %v314_v22 = vpop.f32.mrb[7].mxu1 }
 0x1c9   :  { %v315_v23 = vadd.f32 %v314_v22, %v218_v20 }
 0x1ca   :  { %1220 = vtanh.f32 %v320_v21 }
 0x1cb   :  { %1222 = vtanh.f32 %v315_v23 }
 0x1cc   :  { %1224 = vtanh.f32 %v493_v34 }
 0x1cd   :  { %1226 = vtanh.f32 %v501_v36 }
 0x1d0   :  { %v1217_v24 = vpop.eup %1216 }
 0x1d1   :  { %v1219_v25 = vpop.eup %1218 }
 0x1d2   :  { %v1170_v26 = vpack.c.bf16 %v1217_v24, %v1219_v25 }
 0x1d4   :  { %v1221_v27 = vpop.eup %1220  ;;  %1171 = vmatpush3.bf16.msra.mxu0 %v1170_v26  ;;  %1177 = vmatpush3.bf16.msra.mxu1 %v1170_v26 }
 0x1d5   :  { %v1223_v28 = vpop.eup %1222  ;;  %1172 = vmatprep.subr.bf16.mxu0 %v1277_v10  ;;  %1178 = vmatprep.subr.bf16.mxu1 %v1277_v10 }
 0x1d6   :  { %v1173_v29 = vpack.c.bf16 %v1221_v27, %v1223_v28  ;;  %v1225_v41 = vpop.eup %1224  ;;  %v678_v28 = vld [vmem:[%s1544_s2 + $0x78] sm:$0xff] }
 0x1d7   :  { %v1227_v47 = vpop.eup %1226 }
 0x1d8   :  { %1174 = vmatpush3.bf16.msra.mxu0 %v1173_v29  ;;  %1180 = vmatpush3.bf16.msra.mxu1 %v1173_v29  ;;  %v679_v29 = vld [vmem:[%s1544_s2 + $0x80] sm:$0xff] }
 0x1d9   :  { %1189 = vmatprep.subr.bf16.mxu1 %v1277_v10 }
 0x1db   :  { %1104 = vmatmul.mubr.msk.f32.vlgmr.msra.gmra.mrb[0].mxu0 %vm225_vm2, %v327_v30  ;;  %1115 = vmatmul.mubr.msk.f32.vlgmr.msra.gmra.mrb[8].mxu1 %vm225_vm2, %v407_v31  ;;  %v680_v30 = vld [vmem:[%s1544_s2 + $0x88] sm:$0xff]  ;;  %v693_v31 = vpop.permute.xlu1 %692 }
 0x1dc   :  { %1147 = vmatprep.mubr.msk.f32.mxu1 %vm1278_vm3, %v1279_v11  ;;  %1119 = vmatprep.mubr.msk.f32.mxu0 %vm87_vm1, %v565_v32  ;;  %v688_v32 = vpop.permute.xlu0 %687 }
 0x2ae   :  { %v403_v39 = vpop.f32.mrb[0].mxu0  ;;  %v483_v40 = vpop.f32.mrb[8].mxu1 }
 0x2af   :  { %v404_v42 = vadd.f32 %v403_v39, %v332_v37  ;;  %v484_v44 = vadd.f32 %v483_v40, %v412_v38  ;;  %v1105_v45 = vpop.f32.mrb[1].mxu0  ;;  %v1116_v46 = vpop.f32.mrb[9].mxu1 }
 0x2b0   :  { %v703_v37 = vpop.permute.xlu1 %702  ;;  %v698_v39 = vpop.permute.xlu0 %697 }
 0x2b1   :  { %v503_v48 = vmul.f32 %v1225_v41, %v404_v42  ;;  %v507_v49 = vmul.f32 %v1227_v47, %v484_v44 }
 0x2b3   :  { %v504_v50 = vmul.f32 1.442695, %v503_v48 }
 0x2b5   :  { %1228 = vpow2.f32 %v504_v50  ;;  %v886_v50 = vld [vmem:[%s1544_s2 + $0x98] sm:$0x3] }
 0x2bf   :  { %v1229_v52 = vpop.eup %1228 }
 0x2c0   :  { %v506_v53 = vmul.f32 %v1229_v52, %v20_v51  ;;  %v970_v51 = vpop.permute.xlu0 %969 }
 0x2c2   :  { %v508_v54 = vadd.f32 %v507_v49, %v506_v53  ;;  %v806_v49 = vld [vmem:[%s1544_s2 + $0x90] sm:$0x3]  ;;  %v972_v53 = vmul.f32 %v1434_v43, %v970_v51  ;;  %s1280_s2 = smov [#allocation2]  }
 0x2c3   :  { %s996_s16 = sshll.u32 %s1280_s2, 4  ;;  %s997_s16 = int_to_ptr.vmem [resolvable:$true] %s996_s16 }
 0x2c4   :  { %989 = vst [vmem:[#allocation2 + $0x2] sm:$0x3] %v508_v54  ;;  %1117 = vmatprep.subr.msk.mxu0 %vm100_vm0, %v508_v54  ;;  %v978_v52 = vpop.permute.xlu0 %977  ;;  %s1252_s17 = scalar_lea.vmem %s997_s16, 64  ;;  %p1257_p1 = scmp.lt.s32.totalorder %s997_s16, %s997_s16 }
 0x2c5   :  { %1118 = vmatpush3.msk.msra.mxu0 %vm100_vm0, %v508_v54  ;;  %v811_v54 = vpop.permute.xlu1 %810  ;;  %p1253_p0 = scmp.ne.s32.totalorder %s997_s16, %s1252_s17  ;;  %p1258_p2 = scmp.lt.s32.totalorder %s1252_s17, %s1252_s17 }
 0x2c6   :  { %1120 = vmatmul.mubr.msk.f32.vlgmr.msra.gmra.mrb[2].mxu0 %vm87_vm1, %v566_v55 }
 0x2c7   :  { %1122 = vmatprep.mubr.msk.f32.mxu0 %vm87_vm1, %v567_v56  ;;  %p1259_p3 = por %p1258_p2, %p1257_p1 }
 0x2c9   :  { %v891_v55 = vpop.permute.xlu1 %890  ;;  %p1260_p4 = pnand %p1259_p3, %p1253_p0 }
 0x2ca   :  { %1123 = vmatmul.mubr.msk.f32.gmra.mrb[4].mxu0 %vm87_vm1, %v568_v57 }
 0x2cb   :  { %1133 = vmatprep.mubr.msk.f32.mxu0 %vm225_vm2, %v677_v58 }
 0x399   :  { %v1121_v8 = vpop.f32.mrb[2].mxu0 }
 0x39a   :  { %v670_v9 = vadd.f32 %v1121_v8, %v562_v4  ;;  %v650_v12 = vpop.f32.mrb[3].mxu0 }
 0x39b   :  { %v669_v14 = vadd.f32 %v650_v12, %v561_v6 }
 0x39c   :  { %1230 = vtanh.f32 %v670_v9 }
 0x39d   :  { %1232 = vtanh.f32 %v669_v14  ;;  %v1124_v18 = vpop.f32.mrb[4].mxu0 }
 0x39e   :  { %v672_v19 = vadd.f32 %v1124_v18, %v564_v15  ;;  %v660_v20 = vpop.f32.mrb[5].mxu0 }
 0x39f   :  { %v671_v21 = vadd.f32 %v660_v20, %v563_v17 }
 0x3a0   :  { %1234 = vtanh.f32 %v672_v19 }
 0x3a1   :  { %1236 = vtanh.f32 %v671_v21 }
 0x3a6   :  { %v1231_v22 = vpop.eup %1230 }
 0x3a7   :  { %v1233_v23 = vpop.eup %1232 }
 0x3a8   :  { %v1181_v24 = vpack.c.bf16 %v1231_v22, %v1233_v23 }
 0x3aa   :  { %v1235_v25 = vpop.eup %1234  ;;  %1182 = vmatprep.subr.bf16.mxu0 %v1181_v24 }
 0x3ab   :  { %v1237_v26 = vpop.eup %1236  ;;  %1184 = vmatpush3.bf16.msra.mxu0 %v1181_v24 }
 0x3ac   :  { %v1185_v27 = vpack.c.bf16 %v1235_v25, %v1237_v26 }
 0x3ae   :  { %1186 = vmatprep.subr.bf16.mxu0 %v1185_v27 }
 0x3af   :  { %1188 = vmatpush3.bf16.msra.mxu0 %v1185_v27 }
 0x3b0   :  { %1195 = vmatprep.subr.bf16.mxu0 %v1277_v10 }
 0x3b2   :  { %1134 = vmatmul.mubr.msk.f32.vlgmr.msra.gmra.mrb[6].mxu0 %vm225_vm2, %v678_v28 }
 0x3b3   :  { %1136 = vmatprep.mubr.msk.f32.mxu0 %vm225_vm2, %v679_v29 }
 0x3b6   :  { %1137 = vmatmul.mubr.msk.f32.gmra.mrb[8].mxu0 %vm225_vm2, %v680_v30 }
 0x3b7   :  { %1158 = vmatprep.mubr.msk.f32.mxu0 %vm1278_vm3, %v1279_v11 }
 0x485   :  { %v1135_v33 = vpop.f32.mrb[6].mxu0 }
 0x486   :  { %v789_v34 = vadd.f32 %v1135_v33, %v693_v31  ;;  %v783_v35 = vpop.f32.mrb[7].mxu0 }
 0x487   :  { %v784_v36 = vadd.f32 %v783_v35, %v688_v32 }
 0x488   :  { %1238 = vtanh.f32 %v789_v34 }
 0x489   :  { %1240 = vtanh.f32 %v784_v36  ;;  %v1138_v38 = vpop.f32.mrb[8].mxu0 }
 0x48a   :  { %v799_v40 = vadd.f32 %v1138_v38, %v703_v37  ;;  %v793_v41 = vpop.f32.mrb[9].mxu0 }
 0x48b   :  { %v794_v42 = vadd.f32 %v793_v41, %v698_v39 }
 0x48c   :  { %1242 = vtanh.f32 %v799_v40 }
 0x48d   :  { %1244 = vtanh.f32 %v794_v42 }
 0x48e   :  { %1246 = vtanh.f32 %v972_v53 }
 0x492   :  { %v1239_v44 = vpop.eup %1238 }
 0x493   :  { %v1241_v45 = vpop.eup %1240 }
 0x494   :  { %v1190_v46 = vpack.c.bf16 %v1239_v44, %v1241_v45 }
 0x496   :  { %v1243_v11 = vpop.eup %1242  ;;  %1191 = vmatpush3.bf16.msra.mxu1 %v1190_v46  ;;  %1197 = vmatpush3.bf16.msra.mxu0 %v1190_v46 }
 0x497   :  { %v1245_v47 = vpop.eup %1244  ;;  %1192 = vmatprep.subr.bf16.mxu1 %v1277_v10  ;;  %1198 = vmatprep.subr.bf16.mxu0 %v1277_v10  ;;  %v980_v10 = vmul.f32 %v1434_v43, %v978_v52 }
 0x498   :  { %v1193_v48 = vpack.c.bf16 %v1243_v11, %v1245_v47  ;;  %v1247_v58 = vpop.eup %1246 }
 0x499   :  { %1248 = vtanh.f32 %v980_v10 }
 0x49a   :  { %1194 = vmatpush3.bf16.msra.mxu1 %v1193_v48  ;;  %1200 = vmatpush3.bf16.msra.mxu0 %v1193_v48 }
 0x49d   :  { %1148 = vmatmul.mubr.msk.f32.vlgmr.msra.gmra.mrb[10].mxu1 %vm225_vm2, %v806_v49  ;;  %1159 = vmatmul.mubr.msk.f32.vlgmr.msra.gmra.mrb[10].mxu0 %vm225_vm2, %v886_v50 }
 0x4a3   :  { %v1249_v63 = vpop.eup %1248 }
 0x570   :  { %v882_v56 = vpop.f32.mrb[10].mxu1  ;;  %v962_v57 = vpop.f32.mrb[10].mxu0 }
 0x571   :  { %v883_v59 = vadd.f32 %v882_v56, %v811_v54  ;;  %v963_v60 = vadd.f32 %v962_v57, %v891_v55  ;;  %v1149_v61 = vpop.f32.mrb[11].mxu1  ;;  %v1160_v62 = vpop.f32.mrb[11].mxu0 }
 0x573   :  { %v982_v1 = vmul.f32 %v1247_v58, %v883_v59  ;;  %v986_v2 = vmul.f32 %v1249_v63, %v963_v60 }
 0x575   :  { %v983_v3 = vmul.f32 1.442695, %v982_v1 }
 0x577   :  { %1250 = vpow2.f32 %v983_v3 }
 0x581   :  { %v1251_v4 = vpop.eup %1250 }
 0x582   :  { %v985_v43 = vmul.f32 %v1251_v4, %v1309_v0 }
 0x584   :  { %v987_v5 = vadd.f32 %v986_v2, %v985_v43 }
 0x586   :  { %988 = vst [vmem:[#allocation2] sm:$0x3] %v987_v5 }
 0x587   :  { %1263 = shalt.err (!%p1260_p4)
}
 0x588   :  { %s1264_s20 = scalar_lea.hbm %s1546_s4, 64 }
 0x589   :  { %p1265_p5 = scmp.ne.s32.totalorder %s1546_s4, %s1264_s20  ;;  %p1268_p6 = scmp.lt.u32.totalorder %s1264_s20, %s1546_s4 }
 0x58b   :  { %p1270_p7 = pnand %p1268_p6, %p1265_p5 }
 0x58d   :  { %1273 = shalt.err (!%p1270_p7)
}
 0x58e   :  { %999 = dma.vmem_to_hbm [thread:$0]  %s997_s16, 64, %s1546_s4, [#allocation3]  }
 0x58f   :  { %1274 = dma.done.wait [#allocation3], 64  }
 0x590   :  { %1275 = vsyncadd [#allocation3], 4294967232 }
 0x591   :  { %1003 = vsyncpa [#allocation3], 1 }

// kernel: tpu_custom_call.1
= control target key start
LH: loop header
LB: loop body
LE: loop exit
PB: predicated region body
PF: predicated region fallthrough
CT: control target
= control target key end

     0   :  { %vm100_vm0 = vcmask 1041408   ;;  %vm87_vm1 = vcmask 15360   ;;  %v1276_v5 = vmov 0   ;;  %s1542_s0 = inlined_call_operand.vmem [shape: f32[4,128], index: 0, kind: input, shape index: {}]   ;;  %s1543_s1 = inlined_call_operand.vmem [shape: f32[1,128], index: 1, kind: input, shape index: {}]   ;;  %s1544_s2 = inlined_call_operand.vmem [shape: f32[160,32], index: 2, kind: input, shape index: {}]   ;;  %s1545_s3 = inlined_call_operand.vmem [shape: f32[256,1], index: 3, kind: input, shape index: {}]   ;;  %s1546_s4 = inlined_call_operand.hbm [shape: f32[4,128], index: 4, kind: output, shape index: {}]  }
   0x1   :  { %v1309_v0 = vld [vmem:[%s1542_s0] sm:$0x3]  ;;  %v84_v2 = vld [vmem:[%s1544_s2 + $0x8] sm:$0xff]  ;;  %v85_v3 = vld [vmem:[%s1544_s2 + $0x10] sm:$0xff]  ;;  %1207 = vset.pattern.permute.xlu1 %v1276_v5  ;;  %1206 = vset.pattern.permute.xlu0 %v1276_v5 }
   0x2   :  { %v83_v1 = vld [vmem:[%s1544_s2] sm:$0xff]  ;;  %1073 = vmatprep.subr.msk.mxu1 %vm100_vm0, %v1309_v0  ;;  %v86_v7 = vld [vmem:[%s1544_s2 + $0x18] sm:$0xff]  ;;  %v56_v8 = vld [vmem:[%s1545_s3 + $0x28] sm:$0xff] }
   0x3   :  { %1075 = vmatprep.mubr.msk.f32.mxu1 %vm87_vm1, %v83_v1  ;;  %v55_v4 = vld [vmem:[%s1545_s3 + $0x20] sm:$0xff]  ;;  %1074 = vmatpush3.msk.msra.mxu1 %vm100_vm0, %v1309_v0  ;;  %v22_v9 = vld [vmem:[%s1545_s3 + $0x8] sm:$0xff]  ;;  %v24_v10 = vld [vmem:[%s1545_s3 + $0x18] sm:$0xff] }
   0x4   :  { %v21_v6 = vld [vmem:[%s1545_s3] sm:$0xff]  ;;  %1076 = vmatmul.mubr.msk.f32.vlgmr.msra.gmra.mrb[0].mxu1 %vm87_vm1, %v84_v2  ;;  %61 = vperm.xlu1 %1207, %v55_v4   ;;  %v23_v11 = vld [vmem:[%s1545_s3 + $0x10] sm:$0xff] }
   0x5   :  { %1078 = vmatprep.mubr.msk.f32.mxu1 %vm87_vm1, %v85_v3  ;;  %27 = vperm.xlu0 %1206, %v21_v6  }
   0x8   :  { %1079 = vmatmul.mubr.msk.f32.gmra.mrb[2].mxu1 %vm87_vm1, %v86_v7  ;;  %66 = vperm.xlu1 %1207, %v56_v8  }
   0x9   :  { %32 = vperm.xlu0 %1206, %v22_v9  }
   0xc   :  { %42 = vperm.xlu1 %1207, %v24_v10  }
   0xd   :  { %9 = vsyncpa [#allocation3], 0  ;;  %37 = vperm.xlu0 %1206, %v23_v11   ;;  %v58_v12 = vld [vmem:[%s1545_s3 + $0x38] sm:$0xff]  ;;  %v57_v13 = vld [vmem:[%s1545_s3 + $0x30] sm:$0xff]  ;;  %vm225_vm2 = vcmask 261120   ;;  %v1277_v10 = vmov 0.0|0.0  }
   0xe   :  { %v202_v14 = vld [vmem:[%s1545_s3 + $0x48] sm:$0xff]  ;;  %v201_v15 = vld [vmem:[%s1545_s3 + $0x40] sm:$0xff]  ;;  %v204_v16 = vld [vmem:[%s1545_s3 + $0x58] sm:$0xff]  ;;  %1169 = vmatprep.subr.bf16.mxu0 %v1277_v10  ;;  %vm1278_vm3 = vmmov 0   ;;  %v1279_v11 = vmov 0.0  }
   0xf   :  { %v203_v17 = vld [vmem:[%s1545_s3 + $0x50] sm:$0xff]  ;;  %v328_v18 = vld [vmem:[%s1545_s3 + $0x60] sm:$0x3]  ;;  %v408_v20 = vld [vmem:[%s1545_s3 + $0x68] sm:$0x3]  ;;  %1103 = vmatprep.mubr.msk.f32.mxu0 %vm1278_vm3, %v1279_v11 }
  0x10   :  { %76 = vperm.xlu1 %1207, %v58_v12   ;;  %v487_v19 = vld [vmem:[%s1545_s3 + $0x70] sm:$0x3]  ;;  %v495_v21 = vld [vmem:[%s1545_s3 + $0x78] sm:$0x3]  ;;  %v510_v22 = vld [vmem:[%s1545_s3 + $0x88] sm:$0xff] }
  0x11   :  { %71 = vperm.xlu0 %1206, %v57_v13   ;;  %v509_v23 = vld [vmem:[%s1545_s3 + $0x80] sm:$0xff]  ;;  %v538_v24 = vld [vmem:[%s1545_s3 + $0xa8] sm:$0xff]  ;;  %v512_v26 = vld [vmem:[%s1545_s3 + $0x98] sm:$0xff] }
  0x12   :  { %v537_v25 = vld [vmem:[%s1545_s3 + $0xa0] sm:$0xff]  ;;  %v511_v27 = vld [vmem:[%s1545_s3 + $0x90] sm:$0xff]  ;;  %v540_v28 = vld [vmem:[%s1545_s3 + $0xb8] sm:$0xff] }
  0x13   :  { %v539_v29 = vld [vmem:[%s1545_s3 + $0xb0] sm:$0xff]  ;;  %v682_v30 = vld [vmem:[%s1545_s3 + $0xc8] sm:$0xff]  ;;  %v681_v31 = vld [vmem:[%s1545_s3 + $0xc0] sm:$0xff] }
  0x14   :  { %212 = vperm.xlu1 %1207, %v202_v14   ;;  %v684_v32 = vld [vmem:[%s1545_s3 + $0xd8] sm:$0xff]  ;;  %v683_v33 = vld [vmem:[%s1545_s3 + $0xd0] sm:$0xff]  ;;  %v807_v34 = vld [vmem:[%s1545_s3 + $0xe0] sm:$0x3] }
  0x15   :  { %207 = vperm.xlu0 %1206, %v201_v15   ;;  %v966_v35 = vld [vmem:[%s1545_s3 + $0xf0] sm:$0x3]  ;;  %v887_v36 = vld [vmem:[%s1545_s3 + $0xe8] sm:$0x3]  ;;  %v974_v37 = vld [vmem:[%s1545_s3 + $0xf8] sm:$0x3] }
  0x16   :  { %v197_v38 = vld [vmem:[%s1544_s2 + $0x20] sm:$0xff]  ;;  %v198_v7 = vld [vmem:[%s1544_s2 + $0x28] sm:$0xff]  ;;  %v199_v8 = vld [vmem:[%s1544_s2 + $0x30] sm:$0xff] }
  0x17   :  { %1089 = vmatprep.mubr.msk.f32.mxu1 %vm225_vm2, %v197_v38  ;;  %v1434_v43 = vld [vmem:[%s1543_s1] ss:$0 sm:$0xff]  ;;  %v200_v9 = vld [vmem:[%s1544_s2 + $0x38] sm:$0xff] }
  0x18   :  { %222 = vperm.xlu1 %1207, %v204_v16  }
  0x19   :  { %217 = vperm.xlu0 %1206, %v203_v17  }
  0x1c   :  { %331 = vperm.xlu1 %1207, %v328_v18  }
  0x1d   :  { %490 = vperm.xlu0 %1206, %v487_v19  }
  0x20   :  { %411 = vperm.xlu1 %1207, %v408_v20  }
  0x21   :  { %498 = vperm.xlu0 %1206, %v495_v21  }
  0x24   :  { %520 = vperm.xlu1 %1207, %v510_v22  }
  0x25   :  { %515 = vperm.xlu0 %1206, %v509_v23  }
  0x28   :  { %548 = vperm.xlu1 %1207, %v538_v24  }
  0x29   :  { %543 = vperm.xlu0 %1206, %v537_v25  }
  0x2c   :  { %530 = vperm.xlu1 %1207, %v512_v26  }
  0x2d   :  { %525 = vperm.xlu0 %1206, %v511_v27  }
  0x30   :  { %558 = vperm.xlu1 %1207, %v540_v28  }
  0x31   :  { %553 = vperm.xlu0 %1206, %v539_v29  }
  0x34   :  { %692 = vperm.xlu1 %1207, %v682_v30   ;;  %v327_v30 = vld [vmem:[%s1544_s2 + $0x40] sm:$0x3] }
  0x35   :  { %687 = vperm.xlu0 %1206, %v681_v31   ;;  %v407_v31 = vld [vmem:[%s1544_s2 + $0x48] sm:$0x3] }
  0x38   :  { %702 = vperm.xlu1 %1207, %v684_v32   ;;  %v565_v32 = vld [vmem:[%s1544_s2 + $0x50] sm:$0xff] }
  0x39   :  { %697 = vperm.xlu0 %1206, %v683_v33  }
  0x3c   :  { %810 = vperm.xlu1 %1207, %v807_v34  }
  0x3d   :  { %969 = vperm.xlu0 %1206, %v966_v35  }
  0x40   :  { %890 = vperm.xlu1 %1207, %v887_v36  }
  0x41   :  { %977 = vperm.xlu0 %1206, %v974_v37  }
  0x83   :  { %v62_v39 = vpop.permute.xlu1 %61 }
  0x84   :  { %v28_v40 = vpop.permute.xlu0 %27 }
  0x85   :  { %v51_v45 = vmul.f32 %v1434_v43, %v28_v40 }
  0x87   :  { %v67_v41 = vpop.permute.xlu1 %66  ;;  %v79_v52 = vadd.f32 %v62_v39, %v51_v45 }
  0x88   :  { %v33_v42 = vpop.permute.xlu0 %32 }
  0x89   :  { %v52_v44 = vmul.f32 %v1434_v43, %v33_v42 }
  0x8b   :  { %v43_v46 = vpop.permute.xlu1 %42  ;;  %v80_v49 = vadd.f32 %v67_v41, %v52_v44 }
  0x8c   :  { %v38_v47 = vpop.permute.xlu0 %37  ;;  %v54_v48 = vmul.f32 %v1434_v43, %v43_v46 }
  0x8d   :  { %v53_v50 = vmul.f32 %v1434_v43, %v38_v47 }
  0x8f   :  { %v77_v55 = vpop.permute.xlu1 %76 }
  0x90   :  { %v82_v57 = vadd.f32 %v77_v55, %v54_v48  ;;  %v72_v58 = vpop.permute.xlu0 %71  ;;  %v566_v55 = vld [vmem:[%s1544_s2 + $0x58] sm:$0xff] }
  0x91   :  { %v81_v59 = vadd.f32 %v72_v58, %v53_v50  ;;  %v677_v58 = vld [vmem:[%s1544_s2 + $0x70] sm:$0xff] }
  0x93   :  { %v213_v12 = vpop.permute.xlu1 %212 }
  0x94   :  { %v208_v13 = vpop.permute.xlu0 %207 }
  0x97   :  { %v223_v18 = vpop.permute.xlu1 %222 }
  0x98   :  { %v218_v20 = vpop.permute.xlu0 %217 }
  0x9b   :  { %v332_v37 = vpop.permute.xlu1 %331 }
  0x9c   :  { %v491_v33 = vpop.permute.xlu0 %490 }
  0x9d   :  { %v493_v34 = vmul.f32 %v1434_v43, %v491_v33 }
  0x9f   :  { %v412_v38 = vpop.permute.xlu1 %411 }
  0xa0   :  { %v499_v35 = vpop.permute.xlu0 %498 }
  0xa1   :  { %v501_v36 = vmul.f32 %v1434_v43, %v499_v35 }
  0xd7   :  { %v1077_v51 = vpop.f32.mrb[0].mxu1 }
  0xd8   :  { %v190_v53 = vadd.f32 %v1077_v51, %v80_v49  ;;  %v170_v54 = vpop.f32.mrb[1].mxu1  ;;  %v20_v51 = vld [vmem:[%s1542_s0 + $0x2] sm:$0x3] }
  0xd9   :  { %v189_v56 = vadd.f32 %v170_v54, %v79_v52 }
  0xda   :  { %1208 = vtanh.f32 %v190_v53 }
  0xdb   :  { %1210 = vtanh.f32 %v189_v56  ;;  %v1080_v60 = vpop.f32.mrb[2].mxu1  ;;  %v567_v56 = vld [vmem:[%s1544_s2 + $0x60] sm:$0xff] }
  0xdc   :  { %v192_v61 = vadd.f32 %v1080_v60, %v82_v57  ;;  %v180_v62 = vpop.f32.mrb[3].mxu1  ;;  %v568_v57 = vld [vmem:[%s1544_s2 + $0x68] sm:$0xff]  ;;  %v516_v60 = vpop.permute.xlu0 %515 }
  0xdd   :  { %v191_v63 = vadd.f32 %v180_v62, %v81_v59  ;;  %v521_v59 = vpop.permute.xlu1 %520 }
  0xde   :  { %1212 = vtanh.f32 %v192_v61 }
  0xdf   :  { %1214 = vtanh.f32 %v191_v63  ;;  %v534_v63 = vmul.f32 %v1434_v43, %v521_v59 }
  0xe0   :  { %v544_v62 = vpop.permute.xlu0 %543 }
  0xe1   :  { %v549_v61 = vpop.permute.xlu1 %548 }
  0xe4   :  { %v1209_v1 = vpop.eup %1208 }
  0xe5   :  { %v1211_v2 = vpop.eup %1210 }
  0xe6   :  { %v1161_v3 = vpack.c.bf16 %v1209_v1, %v1211_v2  ;;  %v533_v1 = vmul.f32 %v1434_v43, %v516_v60  ;;  %v531_v2 = vpop.permute.xlu1 %530 }
  0xe8   :  { %v1213_v4 = vpop.eup %1212  ;;  %1162 = vmatprep.subr.bf16.mxu1 %v1161_v3 }
  0xe9   :  { %v1215_v5 = vpop.eup %1214  ;;  %1164 = vmatpush3.bf16.msra.mxu1 %v1161_v3  ;;  %v526_v3 = vpop.permute.xlu0 %525 }
  0xea   :  { %v1165_v6 = vpack.c.bf16 %v1213_v4, %v1215_v5  ;;  %v562_v4 = vadd.f32 %v549_v61, %v534_v63  ;;  %v536_v5 = vmul.f32 %v1434_v43, %v531_v2 }
  0xec   :  { %1166 = vmatprep.subr.bf16.mxu1 %v1165_v6 }
  0xed   :  { %1168 = vmatpush3.bf16.msra.mxu1 %v1165_v6  ;;  %v561_v6 = vadd.f32 %v544_v62, %v533_v1 }
  0xee   :  { %1175 = vmatprep.subr.bf16.mxu1 %v1277_v10 }
  0xf0   :  { %1090 = vmatmul.mubr.msk.f32.vlgmr.msra.gmra.mrb[4].mxu1 %vm225_vm2, %v198_v7  ;;  %v535_v7 = vmul.f32 %v1434_v43, %v526_v3 }
  0xf1   :  { %1092 = vmatprep.mubr.msk.f32.mxu1 %vm225_vm2, %v199_v8 }
  0xf4   :  { %1093 = vmatmul.mubr.msk.f32.gmra.mrb[6].mxu1 %vm225_vm2, %v200_v9 }
  0xf5   :  { %1114 = vmatprep.mubr.msk.f32.mxu1 %vm1278_vm3, %v1279_v11 }
 0x1c3   :  { %v1091_v14 = vpop.f32.mrb[4].mxu1 }
 0x1c4   :  { %v310_v15 = vadd.f32 %v1091_v14, %v213_v12  ;;  %v304_v16 = vpop.f32.mrb[5].mxu1 }
 0x1c5   :  { %v305_v17 = vadd.f32 %v304_v16, %v208_v13  ;;  %v559_v13 = vpop.permute.xlu1 %558  ;;  %v554_v16 = vpop.permute.xlu0 %553 }
 0x1c6   :  { %1216 = vtanh.f32 %v310_v15  ;;  %v564_v15 = vadd.f32 %v559_v13, %v536_v5 }
 0x1c7   :  { %1218 = vtanh.f32 %v305_v17  ;;  %v1094_v19 = vpop.f32.mrb[6].mxu1  ;;  %v563_v17 = vadd.f32 %v554_v16, %v535_v7 }
 0x1c8   :  { %v320_v21 = vadd.f32 %v1094_v19, %v223_v18  ;;  %v314_v22 = vpop.f32.mrb[7].mxu1 }
 0x1c9   :  { %v315_v23 = vadd.f32 %v314_v22, %v218_v20 }
 0x1ca   :  { %1220 = vtanh.f32 %v320_v21 }
 0x1cb   :  { %1222 = vtanh.f32 %v315_v23 }
 0x1cc   :  { %1224 = vtanh.f32 %v493_v34 }
 0x1cd   :  { %1226 = vtanh.f32 %v501_v36 }
 0x1d0   :  { %v1217_v24 = vpop.eup %1216 }
 0x1d1   :  { %v1219_v25 = vpop.eup %1218 }
 0x1d2   :  { %v1170_v26 = vpack.c.bf16 %v1217_v24, %v1219_v25 }
 0x1d4   :  { %v1221_v27 = vpop.eup %1220  ;;  %1171 = vmatpush3.bf16.msra.mxu0 %v1170_v26  ;;  %1177 = vmatpush3.bf16.msra.mxu1 %v1170_v26 }
 0x1d5   :  { %v1223_v28 = vpop.eup %1222  ;;  %1172 = vmatprep.subr.bf16.mxu0 %v1277_v10  ;;  %1178 = vmatprep.subr.bf16.mxu1 %v1277_v10 }
 0x1d6   :  { %v1173_v29 = vpack.c.bf16 %v1221_v27, %v1223_v28  ;;  %v1225_v41 = vpop.eup %1224  ;;  %v678_v28 = vld [vmem:[%s1544_s2 + $0x78] sm:$0xff] }
 0x1d7   :  { %v1227_v47 = vpop.eup %1226 }
 0x1d8   :  { %1174 = vmatpush3.bf16.msra.mxu0 %v1173_v29  ;;  %1180 = vmatpush3.bf16.msra.mxu1 %v1173_v29  ;;  %v679_v29 = vld [vmem:[%s1544_s2 + $0x80] sm:$0xff] }
 0x1d9   :  { %1189 = vmatprep.subr.bf16.mxu1 %v1277_v10 }
 0x1db   :  { %1104 = vmatmul.mubr.msk.f32.vlgmr.msra.gmra.mrb[0].mxu0 %vm225_vm2, %v327_v30  ;;  %1115 = vmatmul.mubr.msk.f32.vlgmr.msra.gmra.mrb[8].mxu1 %vm225_vm2, %v407_v31  ;;  %v680_v30 = vld [vmem:[%s1544_s2 + $0x88] sm:$0xff]  ;;  %v693_v31 = vpop.permute.xlu1 %692 }
 0x1dc   :  { %1147 = vmatprep.mubr.msk.f32.mxu1 %vm1278_vm3, %v1279_v11  ;;  %1119 = vmatprep.mubr.msk.f32.mxu0 %vm87_vm1, %v565_v32  ;;  %v688_v32 = vpop.permute.xlu0 %687 }
 0x2ae   :  { %v403_v39 = vpop.f32.mrb[0].mxu0  ;;  %v483_v40 = vpop.f32.mrb[8].mxu1 }
 0x2af   :  { %v404_v42 = vadd.f32 %v403_v39, %v332_v37  ;;  %v484_v44 = vadd.f32 %v483_v40, %v412_v38  ;;  %v1105_v45 = vpop.f32.mrb[1].mxu0  ;;  %v1116_v46 = vpop.f32.mrb[9].mxu1 }
 0x2b0   :  { %v703_v37 = vpop.permute.xlu1 %702  ;;  %v698_v39 = vpop.permute.xlu0 %697 }
 0x2b1   :  { %v503_v48 = vmul.f32 %v1225_v41, %v404_v42  ;;  %v507_v49 = vmul.f32 %v1227_v47, %v484_v44 }
 0x2b3   :  { %v504_v50 = vmul.f32 1.442695, %v503_v48 }
 0x2b5   :  { %1228 = vpow2.f32 %v504_v50  ;;  %v886_v50 = vld [vmem:[%s1544_s2 + $0x98] sm:$0x3] }
 0x2bf   :  { %v1229_v52 = vpop.eup %1228 }
 0x2c0   :  { %v506_v53 = vmul.f32 %v1229_v52, %v20_v51  ;;  %v970_v51 = vpop.permute.xlu0 %969 }
 0x2c2   :  { %v508_v54 = vadd.f32 %v507_v49, %v506_v53  ;;  %v806_v49 = vld [vmem:[%s1544_s2 + $0x90] sm:$0x3]  ;;  %v972_v53 = vmul.f32 %v1434_v43, %v970_v51  ;;  %s1280_s2 = smov [#allocation2]  }
 0x2c3   :  { %s996_s16 = sshll.u32 %s1280_s2, 4  ;;  %s997_s16 = int_to_ptr.vmem [resolvable:$true] %s996_s16 }
 0x2c4   :  { %989 = vst [vmem:[#allocation2 + $0x2] sm:$0x3] %v508_v54  ;;  %1117 = vmatprep.subr.msk.mxu0 %vm100_vm0, %v508_v54  ;;  %v978_v52 = vpop.permute.xlu0 %977  ;;  %s1252_s17 = scalar_lea.vmem %s997_s16, 64  ;;  %p1257_p1 = scmp.lt.s32.totalorder %s997_s16, %s997_s16 }
 0x2c5   :  { %1118 = vmatpush3.msk.msra.mxu0 %vm100_vm0, %v508_v54  ;;  %v811_v54 = vpop.permute.xlu1 %810  ;;  %p1253_p0 = scmp.ne.s32.totalorder %s997_s16, %s1252_s17  ;;  %p1258_p2 = scmp.lt.s32.totalorder %s1252_s17, %s1252_s17 }
 0x2c6   :  { %1120 = vmatmul.mubr.msk.f32.vlgmr.msra.gmra.mrb[2].mxu0 %vm87_vm1, %v566_v55 }
 0x2c7   :  { %1122 = vmatprep.mubr.msk.f32.mxu0 %vm87_vm1, %v567_v56  ;;  %p1259_p3 = por %p1258_p2, %p1257_p1 }
 0x2c9   :  { %v891_v55 = vpop.permute.xlu1 %890  ;;  %p1260_p4 = pnand %p1259_p3, %p1253_p0 }
 0x2ca   :  { %1123 = vmatmul.mubr.msk.f32.gmra.mrb[4].mxu0 %vm87_vm1, %v568_v57 }
 0x2cb   :  { %1133 = vmatprep.mubr.msk.f32.mxu0 %vm225_vm2, %v677_v58 }
 0x399   :  { %v1121_v8 = vpop.f32.mrb[2].mxu0 }
 0x39a   :  { %v670_v9 = vadd.f32 %v1121_v8, %v562_v4  ;;  %v650_v12 = vpop.f32.mrb[3].mxu0 }
 0x39b   :  { %v669_v14 = vadd.f32 %v650_v12, %v561_v6 }
 0x39c   :  { %1230 = vtanh.f32 %v670_v9 }
 0x39d   :  { %1232 = vtanh.f32 %v669_v14  ;;  %v1124_v18 = vpop.f32.mrb[4].mxu0 }
 0x39e   :  { %v672_v19 = vadd.f32 %v1124_v18, %v564_v15  ;;  %v660_v20 = vpop.f32.mrb[5].mxu0 }
 0x39f   :  { %v671_v21 = vadd.f32 %v660_v20, %v563_v17 }
 0x3a0   :  { %1234 = vtanh.f32 %v672_v19 }
 0x3a1   :  { %1236 = vtanh.f32 %v671_v21 }
 0x3a6   :  { %v1231_v22 = vpop.eup %1230 }
 0x3a7   :  { %v1233_v23 = vpop.eup %1232 }
 0x3a8   :  { %v1181_v24 = vpack.c.bf16 %v1231_v22, %v1233_v23 }
 0x3aa   :  { %v1235_v25 = vpop.eup %1234  ;;  %1182 = vmatprep.subr.bf16.mxu0 %v1181_v24 }
 0x3ab   :  { %v1237_v26 = vpop.eup %1236  ;;  %1184 = vmatpush3.bf16.msra.mxu0 %v1181_v24 }
 0x3ac   :  { %v1185_v27 = vpack.c.bf16 %v1235_v25, %v1237_v26 }
 0x3ae   :  { %1186 = vmatprep.subr.bf16.mxu0 %v1185_v27 }
 0x3af   :  { %1188 = vmatpush3.bf16.msra.mxu0 %v1185_v27 }
 0x3b0   :  { %1195 = vmatprep.subr.bf16.mxu0 %v1277_v10 }
 0x3b2   :  { %1134 = vmatmul.mubr.msk.f32.vlgmr.msra.gmra.mrb[6].mxu0 %vm225_vm2, %v678_v28 }
 0x3b3   :  { %1136 = vmatprep.mubr.msk.f32.mxu0 %vm225_vm2, %v679_v29 }
 0x3b6   :  { %1137 = vmatmul.mubr.msk.f32.gmra.mrb[8].mxu0 %vm225_vm2, %v680_v30 }
 0x3b7   :  { %1158 = vmatprep.mubr.msk.f32.mxu0 %vm1278_vm3, %v1279_v11 }
 0x485   :  { %v1135_v33 = vpop.f32.mrb[6].mxu0 }
 0x486   :  { %v789_v34 = vadd.f32 %v1135_v33, %v693_v31  ;;  %v783_v35 = vpop.f32.mrb[7].mxu0 }
 0x487   :  { %v784_v36 = vadd.f32 %v783_v35, %v688_v32 }
 0x488   :  { %1238 = vtanh.f32 %v789_v34 }
 0x489   :  { %1240 = vtanh.f32 %v784_v36  ;;  %v1138_v38 = vpop.f32.mrb[8].mxu0 }
 0x48a   :  { %v799_v40 = vadd.f32 %v1138_v38, %v703_v37  ;;  %v793_v41 = vpop.f32.mrb[9].mxu0 }
 0x48b   :  { %v794_v42 = vadd.f32 %v793_v41, %v698_v39 }
 0x48c   :  { %1242 = vtanh.f32 %v799_v40 }
 0x48d   :  { %1244 = vtanh.f32 %v794_v42 }
 0x48e   :  { %1246 = vtanh.f32 %v972_v53 }
 0x492   :  { %v1239_v44 = vpop.eup %1238 }
 0x493   :  { %v1241_v45 = vpop.eup %1240 }
 0x494   :  { %v1190_v46 = vpack.c.bf16 %v1239_v44, %v1241_v45 }
 0x496   :  { %v1243_v11 = vpop.eup %1242  ;;  %1191 = vmatpush3.bf16.msra.mxu1 %v1190_v46  ;;  %1197 = vmatpush3.bf16.msra.mxu0 %v1190_v46 }
 0x497   :  { %v1245_v47 = vpop.eup %1244  ;;  %1192 = vmatprep.subr.bf16.mxu1 %v1277_v10  ;;  %1198 = vmatprep.subr.bf16.mxu0 %v1277_v10  ;;  %v980_v10 = vmul.f32 %v1434_v43, %v978_v52 }
 0x498   :  { %v1193_v48 = vpack.c.bf16 %v1243_v11, %v1245_v47  ;;  %v1247_v58 = vpop.eup %1246 }
 0x499   :  { %1248 = vtanh.f32 %v980_v10 }
 0x49a   :  { %1194 = vmatpush3.bf16.msra.mxu1 %v1193_v48  ;;  %1200 = vmatpush3.bf16.msra.mxu0 %v1193_v48 }
 0x49d   :  { %1148 = vmatmul.mubr.msk.f32.vlgmr.msra.gmra.mrb[10].mxu1 %vm225_vm2, %v806_v49  ;;  %1159 = vmatmul.mubr.msk.f32.vlgmr.msra.gmra.mrb[10].mxu0 %vm225_vm2, %v886_v50 }
 0x4a3   :  { %v1249_v63 = vpop.eup %1248 }
 0x570   :  { %v882_v56 = vpop.f32.mrb[10].mxu1  ;;  %v962_v57 = vpop.f32.mrb[10].mxu0 }
 0x571   :  { %v883_v59 = vadd.f32 %v882_v56, %v811_v54  ;;  %v963_v60 = vadd.f32 %v962_v57, %v891_v55  ;;  %v1149_v61 = vpop.f32.mrb[11].mxu1  ;;  %v1160_v62 = vpop.f32.mrb[11].mxu0 }
 0x573   :  { %v982_v1 = vmul.f32 %v1247_v58, %v883_v59  ;;  %v986_v2 = vmul.f32 %v1249_v63, %v963_v60 }
 0x575   :  { %v983_v3 = vmul.f32 1.442695, %v982_v1 }
 0x577   :  { %1250 = vpow2.f32 %v983_v3 }
 0x581   :  { %v1251_v4 = vpop.eup %1250 }
 0x582   :  { %v985_v43 = vmul.f32 %v1251_v4, %v1309_v0 }
 0x584   :  { %v987_v5 = vadd.f32 %v986_v2, %v985_v43 }
 0x586   :  { %988 = vst [vmem:[#allocation2] sm:$0x3] %v987_v5 }
 0x587   :  { %1263 = shalt.err (!%p1260_p4)
}
 0x588   :  { %s1264_s20 = scalar_lea.hbm %s1546_s4, 64 }
 0x589   :  { %p1265_p5 = scmp.ne.s32.totalorder %s1546_s4, %s1264_s20  ;;  %p1268_p6 = scmp.lt.u32.totalorder %s1264_s20, %s1546_s4 }
 0x58b   :  { %p1270_p7 = pnand %p1268_p6, %p1265_p5 }
 0x58d   :  { %1273 = shalt.err (!%p1270_p7)
}
 0x58e   :  { %999 = dma.vmem_to_hbm [thread:$0]  %s997_s16, 64, %s1546_s4, [#allocation3]  }
 0x58f   :  { %1274 = dma.done.wait [#allocation3], 64  }
 0x590   :  { %1275 = vsyncadd [#allocation3], 4294967232 }
 0x591   :  { %1003 = vsyncpa [#allocation3], 1 }

</bundles_post_ra>
